<compile_context>
chip_gen: v6e
topology: v6e:2x2x1
jax: 0.10.0
libtpu: 0.0.40
codegen_flags: <defaults>
</compile_context>

<pallas_src>
import functools

import jax
import jax.numpy as jnp
from jax.experimental import pallas as pl
from jax.experimental.pallas import tpu as pltpu

EPS = 1e-5
LANE = 128                        # channel dims padded to a multiple of this
VMEM_LIMIT = 32 * 1024 * 1024     # explicit scoped-VMEM budget (safe v5e..v7x)


def _round_up(x, m):
    return (x + m - 1) // m * m


def _images_per_step(n, h, w):
    """Images per pass-1 grid step: aim for >=512 matmul rows per step but
    keep >=2 grid steps so both v7x TensorCores (and the pipeline) get work."""
    rows = h * w
    nb = max(1, min(n, max(1, 512 // max(rows, 1))))
    while nb > 1 and (n % nb != 0 or n // nb < 2):
        nb -= 1
    if (nb * rows) % 8 != 0:      # keep the output block sublane-aligned
        nb = n
    return nb


def _bn_tile_rows(total_m):
    """Rows per pass-2 grid step: large streaming tiles (<=4096), >=2 steps."""
    t = total_m
    while t > 4096 and t % 2 == 0:
        t //= 2
    if t == total_m and t % 2 == 0 and t // 2 >= 256:
        t //= 2
    if t % 8 != 0:
        t = total_m
    return t


# --------------------------------------------------------------------------
# Pass 1: 3x3 conv (3 folded-K matmuls, bf16 operands, f32 VMEM accumulator)
#         + partial BN stats.
# --------------------------------------------------------------------------
def conv_stats_kernel(x_ref, w_ref, y_ref, stats_ref, acc_ref, *, nb, h, w):
    # x_ref:     (NB, H, W, Cp)     bf16  -- NB whole images per block
    # w_ref:     (3, 3*Cp, Coutp)   bf16  -- [kw] x [kh-major, ci-minor] x [co]
    # y_ref:     (NB*H*W, Coutp)    bf16  -- pre-BN conv output tile
    # stats_ref: (1, 2, Coutp)      f32   -- per-tile [sum; sum of squares]
    # acc_ref:   (NB*H*W, Coutp)    f32   -- VMEM accumulator scratch
    cp = x_ref.shape[-1]
    k3 = 3 * cp
    m = nb * h * w
    x = x_ref[...]

    # kh (row) taps: shift along H (a major dim -> cheap tile moves) and fold
    # them into the contraction dim (K = 3*Cp).
    zrow = jnp.zeros((nb, 1, w, cp), x.dtype)
    x_up = jnp.concatenate([zrow, x[:, : h - 1]], axis=1)      # input row r-1
    x_dn = jnp.concatenate([x[:, 1:], zrow], axis=1)           # input row r+1
    xk = jnp.concatenate([x_up, x, x_dn], axis=-1)             # (NB,H,W,3Cp)

    # kw (col) taps: shift along W with zero edge columns -> one matmul each.
    zcol = jnp.zeros((nb, h, 1, k3), x.dtype)
    x_c = xk.reshape(m, k3)                                               # kw=1
    x_l = jnp.concatenate([zcol, xk[:, :, : w - 1]], axis=2).reshape(m, k3)  # kw=0
    x_r = jnp.concatenate([xk[:, :, 1:], zcol], axis=2).reshape(m, k3)       # kw=2

    acc_ref[...] = jnp.dot(x_l, w_ref[0], preferred_element_type=jnp.float32)
    acc_ref[...] = acc_ref[...] + jnp.dot(
        x_c, w_ref[1], preferred_element_type=jnp.float32)
    acc_ref[...] = acc_ref[...] + jnp.dot(
        x_r, w_ref[2], preferred_element_type=jnp.float32)

    acc = acc_ref[...]
    y_ref[...] = acc.astype(y_ref.dtype)                       # bf16 intermediate
    stats_ref[0, 0:1, :] = jnp.sum(acc, axis=0, keepdims=True)
    stats_ref[0, 1:2, :] = jnp.sum(acc * acc, axis=0, keepdims=True)


def conv_and_stats(x, w_mat, *, nb):
    n_pad, h, w, cp = x.shape
    coutp = w_mat.shape[-1]
    steps = n_pad // nb
    m_blk = nb * h * w
    kern = functools.partial(conv_stats_kernel, nb=nb, h=h, w=w)
    return pl.pallas_call(
        kern,
        grid=(steps,),
        in_specs=[
            pl.BlockSpec((nb, h, w, cp), lambda i: (i, 0, 0, 0)),
            pl.BlockSpec(w_mat.shape, lambda i: (0, 0, 0)),
        ],
        out_specs=[
            pl.BlockSpec((m_blk, coutp), lambda i: (i, 0)),
            pl.BlockSpec((1, 2, coutp), lambda i: (i, 0, 0)),
        ],
        out_shape=[
            jax.ShapeDtypeStruct((n_pad * h * w, coutp), jnp.bfloat16),
            jax.ShapeDtypeStruct((steps, 2, coutp), jnp.float32),
        ],
        scratch_shapes=[pltpu.VMEM((m_blk, coutp), jnp.float32)],
        compiler_params=pltpu.CompilerParams(
            dimension_semantics=("parallel",),
            vmem_limit_bytes=VMEM_LIMIT),
    )(x, w_mat)


# --------------------------------------------------------------------------
# Pass 2: per-channel scale/shift (BN) + ReLU, large streaming tiles.
# --------------------------------------------------------------------------
def bn_relu_kernel(y_ref, scale_ref, shift_ref, o_ref):
    y = y_ref[...].astype(jnp.float32)
    out = jnp.maximum(y * scale_ref[...] + shift_ref[...], 0.0)
    o_ref[...] = out.astype(o_ref.dtype)


def bn_relu(y, scale, shift, *, out_dtype):
    total_m, coutp = y.shape
    tile_m = _bn_tile_rows(total_m)
    steps = total_m // tile_m
    return pl.pallas_call(
        bn_relu_kernel,
        grid=(steps,),
        in_specs=[
            pl.BlockSpec((tile_m, coutp), lambda i: (i, 0)),
            pl.BlockSpec((1, coutp), lambda i: (0, 0)),
            pl.BlockSpec((1, coutp), lambda i: (0, 0)),
        ],
        out_specs=pl.BlockSpec((tile_m, coutp), lambda i: (i, 0)),
        out_shape=jax.ShapeDtypeStruct((total_m, coutp), out_dtype),
        compiler_params=pltpu.CompilerParams(
            dimension_semantics=("parallel",),
            vmem_limit_bytes=VMEM_LIMIT),
    )(y, scale, shift)


# --------------------------------------------------------------------------
# One conv -> BN -> ReLU stage
# --------------------------------------------------------------------------
def _conv_bn_relu_stage(x_nhwc, w_mat, gamma_p, beta_p, *, count, out_dtype):
    n, h, w, cp = x_nhwc.shape
    coutp = w_mat.shape[-1]
    nb = _images_per_step(n, h, w)
    n_pad = _round_up(n, nb)
    x = x_nhwc
    if n_pad != n:  # zero images: conv(0)=0 -> no stats contribution, dropped below
        x = jnp.pad(x, ((0, n_pad - n), (0, 0), (0, 0), (0, 0)))

    y_raw, stats = conv_and_stats(x, w_mat, nb=nb)

    # Combine per-tile partial sums -> training-mode BN scale/shift (f32).
    ssum = jnp.sum(stats[:, 0, :], axis=0)
    ssq = jnp.sum(stats[:, 1, :], axis=0)
    mean = ssum / count
    var = jnp.maximum(ssq / count - mean * mean, 0.0)   # biased variance
    inv = jax.lax.rsqrt(var + EPS)
    scale = (gamma_p * inv).reshape(1, coutp).astype(jnp.float32)
    shift = (beta_p - mean * gamma_p * inv).reshape(1, coutp).astype(jnp.float32)

    act = bn_relu(y_raw, scale, shift, out_dtype=out_dtype)
    act = act.reshape(n_pad, h, w, coutp)
    return act[:n] if n_pad != n else act


@functools.partial(jax.jit, static_argnames=("cout",))
def conv_block_forward(x_nchw, w1_mat, g1, b1, w2_mat, g2, b2, *, cout):
    """Equivalent to ConvBlock.forward on NCHW input (training-mode BN)."""
    n, cin, h, w = x_nchw.shape
    cp1 = w1_mat.shape[1] // 3
    x = jnp.transpose(x_nchw, (0, 2, 3, 1))                       # NCHW -> NHWC
    x = jnp.pad(x, ((0, 0), (0, 0), (0, 0), (0, cp1 - cin)))
    x = x.astype(jnp.bfloat16)
    count = n * h * w
    y1 = _conv_bn_relu_stage(x, w1_mat, g1, b1, count=count,
                             out_dtype=jnp.bfloat16)              # bf16 to conv2
    y2 = _conv_bn_relu_stage(y1, w2_mat, g2, b2, count=count,
                             out_dtype=jnp.float32)
    return jnp.transpose(y2[..., :cout], (0, 3, 1, 2))            # NHWC -> NCHW


# --------------------------------------------------------------------------
# Parameters
# --------------------------------------------------------------------------
def init_params(key, in_channels, out_channels, k=3):
    """Raw weights in (kh, kw, cin, cout) layout.  Real PyTorch Conv2d weights
    (cout, cin, kh, kw) would need w.transpose(2, 3, 1, 0) before packing."""
    assert k == 3
    k1, k2 = jax.random.split(key)
    fan1, fan2 = in_channels * k * k, out_channels * k * k
    w1 = jax.random.uniform(k1, (k, k, in_channels, out_channels),
                            minval=-1.0, maxval=1.0) / jnp.sqrt(fan1)
    w2 = jax.random.uniform(k2, (k, k, out_channels, out_channels),
                            minval=-1.0, maxval=1.0) / jnp.sqrt(fan2)
    g = jnp.ones((out_channels,), jnp.float32)
    b = jnp.zeros((out_channels,), jnp.float32)
    return (w1.astype(jnp.float32), g, b, w2.astype(jnp.float32), g, b)


def pack_params(raw, in_channels, out_channels, k=3):
    """Pad channel dims to LANE multiples; weights -> (3, 3*Cin_p, Cout_p) bf16
    laid out [kw] x [kh-major, ci-minor] x [cout] for the folded-K kernel.
    NOTE: gamma/beta MUST be zero-padded so padded output channels stay 0."""
    w1, g1, b1, w2, g2, b2 = raw
    cin_p = _round_up(in_channels, LANE)
    cout_p = _round_up(out_channels, LANE)

    def pack_w(wr, cin, cinp):
        wp = jnp.zeros((k, k * cinp, cout_p), jnp.float32)
        for dh in range(k):
            for dw in range(k):
                wp = wp.at[dw, dh * cinp:dh * cinp + cin,
                           :out_channels].set(wr[dh, dw])
        return wp.astype(jnp.bfloat16)

    def pad_vec(v):
        return jnp.pad(v, (0, cout_p - out_channels)).astype(jnp.float32)

    return (pack_w(w1, in_channels, cin_p), pad_vec(g1), pad_vec(b1),
            pack_w(w2, out_channels, cout_p), pad_vec(g2), pad_vec(b2))


# --------------------------------------------------------------------------
# Pure-JAX f32 reference (training-mode BN), for a loose numeric check
# --------------------------------------------------------------------------
def _reference(x_nchw, w1, g1, b1, w2, g2, b2):
    def stage(x, wr, g, b):
        y = jax.lax.conv_general_dilated(
            x, wr, window_strides=(1, 1), padding="SAME",
            dimension_numbers=("NHWC", "HWIO", "NHWC"))
        mean = jnp.mean(y, axis=(0, 1, 2))
        var = jnp.var(y, axis=(0, 1, 2))
        return jnp.maximum((y - mean) * jax.lax.rsqrt(var + EPS) * g + b, 0.0)

    x = jnp.transpose(x_nchw, (0, 2, 3, 1))
    y1 = stage(x, w1, g1, b1)
    y2 = stage(y1, w2, g2, b2)
    return jnp.transpose(y2, (0, 3, 1, 2))


if __name__ == "__main__":
    in_channels, out_channels, k = 4, 8, 3
    key = jax.random.PRNGKey(0)
    kx, kp = jax.random.split(key)

    x = jax.random.normal(kx, (2, in_channels, 16, 16), dtype=jnp.float32)  # NCHW
    raw = init_params(kp, in_channels, out_channels, k)
    params = pack_params(raw, in_channels, out_channels, k)

    out = conv_block_forward(x, *params, cout=out_channels)
    jax.block_until_ready(out)

    assert out.shape == (2, out_channels, 16, 16)
    assert bool(jnp.all(out >= 0.0))              # ReLU output
    assert bool(jnp.all(jnp.isfinite(out)))

    # Loose check vs f32 XLA reference (kernel uses bf16 MXU operands and a
    # bf16 pre-BN intermediate; stats themselves are accumulated in f32).
    ref = _reference(x, *raw)
    max_diff = float(jnp.max(jnp.abs(out - ref)))
    assert max_diff < 0.5, f"max diff vs reference too large: {max_diff}"

    print("KERNEL_OK")
</pallas_src>

<mosaic_0001>
module attributes {stable_mosaic.version = 11 : i64} {
  func.func @conv_stats_kernel(%arg0: i32, %arg1: memref<1x16x16x128xbf16, #tpu.memory_space<vmem>>, %arg2: memref<3x384x128xbf16, #tpu.memory_space<vmem>>, %arg3: memref<256x128xbf16, #tpu.memory_space<vmem>>, %arg4: memref<1x2x128xf32, #tpu.memory_space<vmem>>, %arg5: memref<256x128xf32, #tpu.memory_space<vmem>>) attributes {dimension_semantics = [#tpu.dimension_semantics<parallel>], iteration_bounds = array<i64: 2>, scalar_prefetch = 0 : i64, scratch_operands = 1 : i64, tpu.core_type = #tpu.core_type<tc>, window_params = [{transform_indices = @transform_0, window_bounds = array<i64: 1, 16, 16, 128>}, {pipeline_mode = #tpu.pipeline_mode<synchronous>, transform_indices = @transform_1, window_bounds = array<i64: 3, 384, 128>}, {transform_indices = @transform_2, window_bounds = array<i64: 256, 128>}, {transform_indices = @transform_3, window_bounds = array<i64: 1, 2, 128>}]} {
    %c0 = arith.constant 0 : index
    %c0_0 = arith.constant 0 : index
    %c0_1 = arith.constant 0 : index
    %c0_2 = arith.constant 0 : index
    %0 = vector.load %arg1[%c0, %c0_0, %c0_1, %c0_2] : memref<1x16x16x128xbf16, #tpu.memory_space<vmem>>, vector<1x16x16x128xbf16>
    %cst = arith.constant 0.000000e+00 : bf16
    %1 = vector.broadcast %cst : bf16 to vector<1x1x16x128xbf16>
    %2 = vector.extract_strided_slice %0 {offsets = [0, 0, 0, 0], sizes = [1, 15, 16, 128], strides = [1, 1, 1, 1]} : vector<1x16x16x128xbf16> to vector<1x15x16x128xbf16>
    %3 = tpu.concatenate %1, %2 in 1 : vector<1x1x16x128xbf16>, vector<1x15x16x128xbf16> -> vector<1x16x16x128xbf16>
    %4 = vector.extract_strided_slice %0 {offsets = [0, 1, 0, 0], sizes = [1, 15, 16, 128], strides = [1, 1, 1, 1]} : vector<1x16x16x128xbf16> to vector<1x15x16x128xbf16>
    %5 = tpu.concatenate %4, %1 in 1 : vector<1x15x16x128xbf16>, vector<1x1x16x128xbf16> -> vector<1x16x16x128xbf16>
    %6 = tpu.concatenate %3, %0, %5 in 3 : vector<1x16x16x128xbf16>, vector<1x16x16x128xbf16>, vector<1x16x16x128xbf16> -> vector<1x16x16x384xbf16>
    %cst_3 = arith.constant 0.000000e+00 : bf16
    %7 = vector.broadcast %cst_3 : bf16 to vector<1x16x1x384xbf16>
    %8 = vector.shape_cast %6 : vector<1x16x16x384xbf16> to vector<256x384xbf16>
    %9 = vector.extract_strided_slice %6 {offsets = [0, 0, 0, 0], sizes = [1, 16, 15, 384], strides = [1, 1, 1, 1]} : vector<1x16x16x384xbf16> to vector<1x16x15x384xbf16>
    %10 = tpu.concatenate %7, %9 in 2 : vector<1x16x1x384xbf16>, vector<1x16x15x384xbf16> -> vector<1x16x16x384xbf16>
    %11 = vector.shape_cast %10 : vector<1x16x16x384xbf16> to vector<256x384xbf16>
    %12 = vector.extract_strided_slice %6 {offsets = [0, 0, 1, 0], sizes = [1, 16, 15, 384], strides = [1, 1, 1, 1]} : vector<1x16x16x384xbf16> to vector<1x16x15x384xbf16>
    %13 = tpu.concatenate %12, %7 in 2 : vector<1x16x15x384xbf16>, vector<1x16x1x384xbf16> -> vector<1x16x16x384xbf16>
    %14 = vector.shape_cast %13 : vector<1x16x16x384xbf16> to vector<256x384xbf16>
    %c0_4 = arith.constant 0 : index
    %c0_5 = arith.constant 0 : index
    %c0_6 = arith.constant 0 : index
    %15 = vector.load %arg2[%c0_4, %c0_5, %c0_6] : memref<3x384x128xbf16, #tpu.memory_space<vmem>>, vector<1x384x128xbf16>
    %16 = vector.shape_cast %15 : vector<1x384x128xbf16> to vector<384x128xbf16>
    %cst_7 = arith.constant dense<0.000000e+00> : vector<256x128xf32>
    %17 = tpu.matmul %11, %16, %cst_7 {dimension_numbers = #tpu.dot_dimension_numbers<[1], [0], [0], [1], [0, 0, 1, 1], [], []>} : vector<256x384xbf16>, vector<384x128xbf16>, vector<256x128xf32> -> vector<256x128xf32>
    %c0_8 = arith.constant 0 : index
    %c0_9 = arith.constant 0 : index
    %18 = vector.load %arg5[%c0_8, %c0_9] : memref<256x128xf32, #tpu.memory_space<vmem>>, vector<256x128xf32>
    tpu.vector_store %arg5[%c0_8, %c0_9], %17 {strides = array<i32>} : memref<256x128xf32, #tpu.memory_space<vmem>>, vector<256x128xf32>,
    %c0_10 = arith.constant 0 : index
    %c0_11 = arith.constant 0 : index
    %19 = vector.load %arg5[%c0_10, %c0_11] : memref<256x128xf32, #tpu.memory_space<vmem>>, vector<256x128xf32>
    %c1 = arith.constant 1 : index
    %c0_12 = arith.constant 0 : index
    %c0_13 = arith.constant 0 : index
    %20 = vector.load %arg2[%c1, %c0_12, %c0_13] : memref<3x384x128xbf16, #tpu.memory_space<vmem>>, vector<1x384x128xbf16>
    %21 = vector.shape_cast %20 : vector<1x384x128xbf16> to vector<384x128xbf16>
    %cst_14 = arith.constant dense<0.000000e+00> : vector<256x128xf32>
    %22 = tpu.matmul %8, %21, %cst_14 {dimension_numbers = #tpu.dot_dimension_numbers<[1], [0], [0], [1], [0, 0, 1, 1], [], []>} : vector<256x384xbf16>, vector<384x128xbf16>, vector<256x128xf32> -> vector<256x128xf32>
    %23 = arith.addf %19, %22 : vector<256x128xf32>
    %c0_15 = arith.constant 0 : index
    %c0_16 = arith.constant 0 : index
    %24 = vector.load %arg5[%c0_15, %c0_16] : memref<256x128xf32, #tpu.memory_space<vmem>>, vector<256x128xf32>
    tpu.vector_store %arg5[%c0_15, %c0_16], %23 {strides = array<i32>} : memref<256x128xf32, #tpu.memory_space<vmem>>, vector<256x128xf32>,
    %c0_17 = arith.constant 0 : index
    %c0_18 = arith.constant 0 : index
    %25 = vector.load %arg5[%c0_17, %c0_18] : memref<256x128xf32, #tpu.memory_space<vmem>>, vector<256x128xf32>
    %c2 = arith.constant 2 : index
    %c0_19 = arith.constant 0 : index
    %c0_20 = arith.constant 0 : index
    %26 = vector.load %arg2[%c2, %c0_19, %c0_20] : memref<3x384x128xbf16, #tpu.memory_space<vmem>>, vector<1x384x128xbf16>
    %27 = vector.shape_cast %26 : vector<1x384x128xbf16> to vector<384x128xbf16>
    %cst_21 = arith.constant dense<0.000000e+00> : vector<256x128xf32>
    %28 = tpu.matmul %14, %27, %cst_21 {dimension_numbers = #tpu.dot_dimension_numbers<[1], [0], [0], [1], [0, 0, 1, 1], [], []>} : vector<256x384xbf16>, vector<384x128xbf16>, vector<256x128xf32> -> vector<256x128xf32>
    %29 = arith.addf %25, %28 : vector<256x128xf32>
    %c0_22 = arith.constant 0 : index
    %c0_23 = arith.constant 0 : index
    %30 = vector.load %arg5[%c0_22, %c0_23] : memref<256x128xf32, #tpu.memory_space<vmem>>, vector<256x128xf32>
    tpu.vector_store %arg5[%c0_22, %c0_23], %29 {strides = array<i32>} : memref<256x128xf32, #tpu.memory_space<vmem>>, vector<256x128xf32>,
    %c0_24 = arith.constant 0 : index
    %c0_25 = arith.constant 0 : index
    %31 = vector.load %arg5[%c0_24, %c0_25] : memref<256x128xf32, #tpu.memory_space<vmem>>, vector<256x128xf32>
    %32 = arith.truncf %31 : vector<256x128xf32> to vector<256x128xbf16>
    %c0_26 = arith.constant 0 : index
    %c0_27 = arith.constant 0 : index
    %33 = vector.load %arg3[%c0_26, %c0_27] : memref<256x128xbf16, #tpu.memory_space<vmem>>, vector<256x128xbf16>
    tpu.vector_store %arg3[%c0_26, %c0_27], %32 {strides = array<i32>} : memref<256x128xbf16, #tpu.memory_space<vmem>>, vector<256x128xbf16>,
    %cst_28 = arith.constant dense<0.000000e+00> : vector<128xf32>
    %34 = vector.multi_reduction <add>, %31, %cst_28 [0] : vector<256x128xf32> to vector<128xf32>
    %35 = vector.shape_cast %34 : vector<128xf32> to vector<1x128xf32>
    %c0_29 = arith.constant 0 : index
    %c0_30 = arith.constant 0 : index
    %c0_31 = arith.constant 0 : index
    %36 = vector.load %arg4[%c0_29, %c0_30, %c0_31] : memref<1x2x128xf32, #tpu.memory_space<vmem>>, vector<1x1x128xf32>
    %37 = vector.shape_cast %36 : vector<1x1x128xf32> to vector<1x128xf32>
    %38 = vector.shape_cast %35 : vector<1x128xf32> to vector<1x1x128xf32>
    tpu.vector_store %arg4[%c0_29, %c0_30, %c0_31], %38 {strides = array<i32>} : memref<1x2x128xf32, #tpu.memory_space<vmem>>, vector<1x1x128xf32>,
    %39 = arith.mulf %31, %31 : vector<256x128xf32>
    %cst_32 = arith.constant dense<0.000000e+00> : vector<128xf32>
    %40 = vector.multi_reduction <add>, %39, %cst_32 [0] : vector<256x128xf32> to vector<128xf32>
    %41 = vector.shape_cast %40 : vector<128xf32> to vector<1x128xf32>
    %c0_33 = arith.constant 0 : index
    %c1_34 = arith.constant 1 : index
    %c0_35 = arith.constant 0 : index
    %42 = vector.load %arg4[%c0_33, %c1_34, %c0_35] : memref<1x2x128xf32, #tpu.memory_space<vmem>>, vector<1x1x128xf32>
    %43 = vector.shape_cast %42 : vector<1x1x128xf32> to vector<1x128xf32>
    %44 = vector.shape_cast %41 : vector<1x128xf32> to vector<1x1x128xf32>
    tpu.vector_store %arg4[%c0_33, %c1_34, %c0_35], %44 {strides = array<i32>} : memref<1x2x128xf32, #tpu.memory_space<vmem>>, vector<1x1x128xf32>,
    return
  }
  func.func @transform_0(%arg0: i32) -> (i32, i32, i32, i32) {
    %c0_i32 = arith.constant 0 : i32
    %c0_i32_0 = arith.constant 0 : i32
    %c0_i32_1 = arith.constant 0 : i32
    %c0_i32_2 = arith.constant 0 : i32
    return %arg0, %c0_i32, %c0_i32_0, %c0_i32_1 : i32, i32, i32, i32
  }
  func.func @transform_1(%arg0: i32) -> (i32, i32, i32) {
    %c0_i32 = arith.constant 0 : i32
    %c0_i32_0 = arith.constant 0 : i32
    %c0_i32_1 = arith.constant 0 : i32
    %c0_i32_2 = arith.constant 0 : i32
    return %c0_i32, %c0_i32_0, %c0_i32_1 : i32, i32, i32
  }
  func.func @transform_2(%arg0: i32) -> (i32, i32) {
    %c0_i32 = arith.constant 0 : i32
    %c0_i32_0 = arith.constant 0 : i32
    return %arg0, %c0_i32 : i32, i32
  }
  func.func @transform_3(%arg0: i32) -> (i32, i32, i32) {
    %c0_i32 = arith.constant 0 : i32
    %c0_i32_0 = arith.constant 0 : i32
    %c0_i32_1 = arith.constant 0 : i32
    return %arg0, %c0_i32, %c0_i32_0 : i32, i32, i32
  }
}

module attributes {stable_mosaic.version = 11 : i64} {
  func.func @bn_relu_kernel(%arg0: i32, %arg1: memref<256x128xbf16, #tpu.memory_space<vmem>>, %arg2: memref<1x128xf32, #tpu.memory_space<vmem>>, %arg3: memref<1x128xf32, #tpu.memory_space<vmem>>, %arg4: memref<256x128xbf16, #tpu.memory_space<vmem>>) attributes {dimension_semantics = [#tpu.dimension_semantics<parallel>], iteration_bounds = array<i64: 2>, scalar_prefetch = 0 : i64, scratch_operands = 0 : i64, tpu.core_type = #tpu.core_type<tc>, window_params = [{transform_indices = @transform_0, window_bounds = array<i64: 256, 128>}, {pipeline_mode = #tpu.pipeline_mode<synchronous>, transform_indices = @transform_1, window_bounds = array<i64: 1, 128>}, {pipeline_mode = #tpu.pipeline_mode<synchronous>, transform_indices = @transform_2, window_bounds = array<i64: 1, 128>}, {transform_indices = @transform_3, window_bounds = array<i64: 256, 128>}]} {
    %c0 = arith.constant 0 : index
    %c0_0 = arith.constant 0 : index
    %0 = vector.load %arg1[%c0, %c0_0] : memref<256x128xbf16, #tpu.memory_space<vmem>>, vector<256x128xbf16>
    %1 = arith.extf %0 : vector<256x128xbf16> to vector<256x128xf32>
    %c0_1 = arith.constant 0 : index
    %c0_2 = arith.constant 0 : index
    %2 = vector.load %arg2[%c0_1, %c0_2] : memref<1x128xf32, #tpu.memory_space<vmem>>, vector<1x128xf32>
    %3 = vector.broadcast %2 : vector<1x128xf32> to vector<256x128xf32>
    %4 = arith.mulf %1, %3 : vector<256x128xf32>
    %c0_3 = arith.constant 0 : index
    %c0_4 = arith.constant 0 : index
    %5 = vector.load %arg3[%c0_3, %c0_4] : memref<1x128xf32, #tpu.memory_space<vmem>>, vector<1x128xf32>
    %6 = vector.broadcast %5 : vector<1x128xf32> to vector<256x128xf32>
    %7 = arith.addf %4, %6 : vector<256x128xf32>
    %cst = arith.constant 0.000000e+00 : f32
    %8 = vector.broadcast %cst : f32 to vector<256x128xf32>
    %9 = arith.maximumf %7, %8 : vector<256x128xf32>
    %10 = arith.truncf %9 : vector<256x128xf32> to vector<256x128xbf16>
    %c0_5 = arith.constant 0 : index
    %c0_6 = arith.constant 0 : index
    %11 = vector.load %arg4[%c0_5, %c0_6] : memref<256x128xbf16, #tpu.memory_space<vmem>>, vector<256x128xbf16>
    tpu.vector_store %arg4[%c0_5, %c0_6], %10 {strides = array<i32>} : memref<256x128xbf16, #tpu.memory_space<vmem>>, vector<256x128xbf16>,
    return
  }
  func.func @transform_0(%arg0: i32) -> (i32, i32) {
    %c0_i32 = arith.constant 0 : i32
    %c0_i32_0 = arith.constant 0 : i32
    return %arg0, %c0_i32 : i32, i32
  }
  func.func @transform_1(%arg0: i32) -> (i32, i32) {
    %c0_i32 = arith.constant 0 : i32
    %c0_i32_0 = arith.constant 0 : i32
    %c0_i32_1 = arith.constant 0 : i32
    return %c0_i32, %c0_i32_0 : i32, i32
  }
  func.func @transform_2(%arg0: i32) -> (i32, i32) {
    %c0_i32 = arith.constant 0 : i32
    %c0_i32_0 = arith.constant 0 : i32
    %c0_i32_1 = arith.constant 0 : i32
    return %c0_i32, %c0_i32_0 : i32, i32
  }
  func.func @transform_3(%arg0: i32) -> (i32, i32) {
    %c0_i32 = arith.constant 0 : i32
    %c0_i32_0 = arith.constant 0 : i32
    return %arg0, %c0_i32 : i32, i32
  }
}

module attributes {stable_mosaic.version = 11 : i64} {
  func.func @bn_relu_kernel(%arg0: i32, %arg1: memref<256x128xbf16, #tpu.memory_space<vmem>>, %arg2: memref<1x128xf32, #tpu.memory_space<vmem>>, %arg3: memref<1x128xf32, #tpu.memory_space<vmem>>, %arg4: memref<256x128xf32, #tpu.memory_space<vmem>>) attributes {dimension_semantics = [#tpu.dimension_semantics<parallel>], iteration_bounds = array<i64: 2>, scalar_prefetch = 0 : i64, scratch_operands = 0 : i64, tpu.core_type = #tpu.core_type<tc>, window_params = [{transform_indices = @transform_0, window_bounds = array<i64: 256, 128>}, {pipeline_mode = #tpu.pipeline_mode<synchronous>, transform_indices = @transform_1, window_bounds = array<i64: 1, 128>}, {pipeline_mode = #tpu.pipeline_mode<synchronous>, transform_indices = @transform_2, window_bounds = array<i64: 1, 128>}, {transform_indices = @transform_3, window_bounds = array<i64: 256, 128>}]} {
    %c0 = arith.constant 0 : index
    %c0_0 = arith.constant 0 : index
    %0 = vector.load %arg1[%c0, %c0_0] : memref<256x128xbf16, #tpu.memory_space<vmem>>, vector<256x128xbf16>
    %1 = arith.extf %0 : vector<256x128xbf16> to vector<256x128xf32>
    %c0_1 = arith.constant 0 : index
    %c0_2 = arith.constant 0 : index
    %2 = vector.load %arg2[%c0_1, %c0_2] : memref<1x128xf32, #tpu.memory_space<vmem>>, vector<1x128xf32>
    %3 = vector.broadcast %2 : vector<1x128xf32> to vector<256x128xf32>
    %4 = arith.mulf %1, %3 : vector<256x128xf32>
    %c0_3 = arith.constant 0 : index
    %c0_4 = arith.constant 0 : index
    %5 = vector.load %arg3[%c0_3, %c0_4] : memref<1x128xf32, #tpu.memory_space<vmem>>, vector<1x128xf32>
    %6 = vector.broadcast %5 : vector<1x128xf32> to vector<256x128xf32>
    %7 = arith.addf %4, %6 : vector<256x128xf32>
    %cst = arith.constant 0.000000e+00 : f32
    %8 = vector.broadcast %cst : f32 to vector<256x128xf32>
    %9 = arith.maximumf %7, %8 : vector<256x128xf32>
    %c0_5 = arith.constant 0 : index
    %c0_6 = arith.constant 0 : index
    %10 = vector.load %arg4[%c0_5, %c0_6] : memref<256x128xf32, #tpu.memory_space<vmem>>, vector<256x128xf32>
    tpu.vector_store %arg4[%c0_5, %c0_6], %9 {strides = array<i32>} : memref<256x128xf32, #tpu.memory_space<vmem>>, vector<256x128xf32>,
    return
  }
  func.func @transform_0(%arg0: i32) -> (i32, i32) {
    %c0_i32 = arith.constant 0 : i32
    %c0_i32_0 = arith.constant 0 : i32
    return %arg0, %c0_i32 : i32, i32
  }
  func.func @transform_1(%arg0: i32) -> (i32, i32) {
    %c0_i32 = arith.constant 0 : i32
    %c0_i32_0 = arith.constant 0 : i32
    %c0_i32_1 = arith.constant 0 : i32
    return %c0_i32, %c0_i32_0 : i32, i32
  }
  func.func @transform_2(%arg0: i32) -> (i32, i32) {
    %c0_i32 = arith.constant 0 : i32
    %c0_i32_0 = arith.constant 0 : i32
    %c0_i32_1 = arith.constant 0 : i32
    return %c0_i32, %c0_i32_0 : i32, i32
  }
  func.func @transform_3(%arg0: i32) -> (i32, i32) {
    %c0_i32 = arith.constant 0 : i32
    %c0_i32_0 = arith.constant 0 : i32
    return %arg0, %c0_i32 : i32, i32
  }
}

</mosaic_0001>

<bundles_post_ra>
// kernel: conv_block_forward.7
= control target key start
LH: loop header
LB: loop body
LE: loop exit
PB: predicated region body
PF: predicated region fallthrough
CT: control target
= control target key end

     0   :  { %s564_s12 = smov 0   ;;  %s711_s0 = inlined_call_operand.vmem [shape: bf16[512,128], index: 0, kind: input, shape index: {}]   ;;  %s712_s1 = inlined_call_operand.vmem [shape: f32[1,128], index: 1, kind: input, shape index: {}]   ;;  %s713_s2 = inlined_call_operand.vmem [shape: f32[1,128], index: 2, kind: input, shape index: {}]   ;;  %s714_s3 = inlined_call_operand.vmem [shape: f32[512,128], index: 3, kind: output, shape index: {}]  }
   0x1 LB: > { %s436_s13 = sadd.s32 4294967295, %s542_s12   ;;  %p440_p0 = scmp.ge.s32.totalorder %s542_s12, 1  ;;  %s542_s12 = sphi %s564_s12, %s13_s12  }
   0x2   : > { %p138_p1 = scmp.lt.s32.totalorder %s542_s12, 3 }
   0x4   : > { %p139_p2 = pnand %p440_p0, %p138_p1 }
   0x5   : > { %s441_s14 = sshll.u32 (!%p139_p2), %s436_s13, 5 }
   0x6   : > { %142 = sbr.rel (%p139_p2) target bundleno = 51 (0x33), region = 32  ;;  %p163_p3 = scmp.lt.s32.totalorder (!%p139_p2), %s441_s14, 63 }
   0xb   : > { %s716_s14 = smov (!%p163_p3, %s441_s14), 63  ;;  %v583_v0 = vld [vmem:[%s712_s1] ss:$0 sm:$0xff] }
   0xc   : > { %s442_s15 = sshll.u32 %s716_s14, 2  ;;  %v592_v9 = vld [vmem:[%s713_s2] ss:$0 sm:$0xff]  ;;  %s444_s23 = sshll.u32 %s716_s14, 3 }
   0xd   : > { %s578_s18 = scalar_lea.vmem %s711_s0, %s442_s15  ;;  %s610_s26 = scalar_lea.vmem %s714_s3, %s444_s23 }
   0xe   : > { %v450_v1 = vld [vmem:[%s578_s18] sm:$0xff]   ;;  %v513_v2 = vld [vmem:[%s578_s18 + $0x8] sm:$0xff]   ;;  %v514_v3 = vld [vmem:[%s578_s18 + $0x10] sm:$0xff]  }
   0xf   : > { %v451_v4 = vunpack.c.l.bf16 %v450_v1  ;;  %v452_v5 = vunpack.c.h.bf16 %v450_v1  ;;  %v455_v6 = vunpack.c.l.bf16 %v513_v2  ;;  %v456_v7 = vunpack.c.h.bf16 %v513_v2  ;;  %v515_v8 = vld [vmem:[%s578_s18 + $0x18] sm:$0xff]   ;;  %v516_v30 = vld [vmem:[%s578_s18 + $0x20] sm:$0xff]   ;;  %v517_v31 = vld [vmem:[%s578_s18 + $0x28] sm:$0xff]  }
  0x10   : > { %v459_v10 = vunpack.c.l.bf16 %v514_v3  ;;  %v460_v11 = vunpack.c.h.bf16 %v514_v3  ;;  %v463_v12 = vunpack.c.l.bf16 %v515_v8  ;;  %v464_v13 = vunpack.c.h.bf16 %v515_v8  ;;  %v518_v36 = vld [vmem:[%s578_s18 + $0x30] sm:$0xff]   ;;  %v519_v37 = vld [vmem:[%s578_s18 + $0x38] sm:$0xff]   ;;  %v520_v3 = vld [vmem:[%s578_s18 + $0x40] sm:$0xff]  }
  0x11   : > { %v245_v14 = vmul.f32 %v451_v4, %v583_v0  ;;  %v246_v15 = vmul.f32 %v452_v5, %v583_v0  ;;  %v247_v16 = vmul.f32 %v455_v6, %v583_v0  ;;  %v248_v17 = vmul.f32 %v456_v7, %v583_v0  ;;  %v521_v4 = vld [vmem:[%s578_s18 + $0x48] sm:$0xff]  }
  0x12   : > { %v249_v18 = vmul.f32 %v459_v10, %v583_v0  ;;  %v250_v19 = vmul.f32 %v460_v11, %v583_v0  ;;  %v251_v20 = vmul.f32 %v463_v12, %v583_v0  ;;  %v252_v21 = vmul.f32 %v464_v13, %v583_v0  ;;  %v522_v10 = vld [vmem:[%s578_s18 + $0x50] sm:$0xff]   ;;  %v523_v11 = vld [vmem:[%s578_s18 + $0x58] sm:$0xff]  }
  0x13   : > { %v284_v22 = vadd.f32 %v592_v9, %v245_v14  ;;  %v285_v23 = vadd.f32 %v592_v9, %v246_v15  ;;  %v286_v24 = vadd.f32 %v592_v9, %v247_v16  ;;  %v287_v25 = vadd.f32 %v592_v9, %v248_v17 }
  0x14   : > { %v288_v26 = vadd.f32 %v592_v9, %v249_v18  ;;  %v289_v27 = vadd.f32 %v592_v9, %v250_v19  ;;  %v290_v28 = vadd.f32 %v592_v9, %v251_v20  ;;  %v291_v29 = vadd.f32 %v592_v9, %v252_v21 }
  0x15   : > { %v316_v32 = vmax.f32 %v284_v22, 0.0  ;;  %v317_v33 = vmax.f32 %v285_v23, 0.0  ;;  %v318_v34 = vmax.f32 %v286_v24, 0.0  ;;  %v319_v35 = vmax.f32 %v287_v25, 0.0 }
  0x16   : > { %v320_v38 = vmax.f32 %v288_v26, 0.0  ;;  %v321_v39 = vmax.f32 %v289_v27, 0.0  ;;  %v322_v40 = vmax.f32 %v290_v28, 0.0  ;;  %v323_v41 = vmax.f32 %v291_v29, 0.0 }
  0x17   : > { %348 = vst [vmem:[%s610_s26] sm:$0xff] %v316_v32  ;;  %349 = vst [vmem:[%s610_s26 + $0x8] sm:$0xff] %v317_v33  ;;  %v467_v42 = vunpack.c.l.bf16 %v516_v30  ;;  %v468_v43 = vunpack.c.h.bf16 %v516_v30  ;;  %v471_v44 = vunpack.c.l.bf16 %v517_v31  ;;  %v472_v45 = vunpack.c.h.bf16 %v517_v31 }
  0x18   : > { %350 = vst [vmem:[%s610_s26 + $0x10] sm:$0xff] %v318_v34  ;;  %351 = vst [vmem:[%s610_s26 + $0x18] sm:$0xff] %v319_v35  ;;  %v475_v46 = vunpack.c.l.bf16 %v518_v36  ;;  %v476_v47 = vunpack.c.h.bf16 %v518_v36  ;;  %v479_v48 = vunpack.c.l.bf16 %v519_v37  ;;  %v480_v49 = vunpack.c.h.bf16 %v519_v37 }
  0x19   : > { %352 = vst [vmem:[%s610_s26 + $0x20] sm:$0xff] %v320_v38  ;;  %353 = vst [vmem:[%s610_s26 + $0x28] sm:$0xff] %v321_v39  ;;  %v253_v50 = vmul.f32 %v467_v42, %v583_v0  ;;  %v254_v51 = vmul.f32 %v468_v43, %v583_v0  ;;  %v255_v52 = vmul.f32 %v471_v44, %v583_v0  ;;  %v483_v16 = vunpack.c.l.bf16 %v520_v3 }
  0x1a   : > { %354 = vst [vmem:[%s610_s26 + $0x30] sm:$0xff] %v322_v40  ;;  %355 = vst [vmem:[%s610_s26 + $0x38] sm:$0xff] %v323_v41  ;;  %v256_v53 = vmul.f32 %v472_v45, %v583_v0  ;;  %v257_v54 = vmul.f32 %v475_v46, %v583_v0  ;;  %v258_v55 = vmul.f32 %v476_v47, %v583_v0  ;;  %v484_v17 = vunpack.c.h.bf16 %v520_v3  ;;  %v524_v40 = vld [vmem:[%s578_s18 + $0x60] sm:$0xff]   ;;  %v525_v41 = vld [vmem:[%s578_s18 + $0x68] sm:$0xff]  }
  0x1b   : > { %v259_v56 = vmul.f32 %v479_v48, %v583_v0  ;;  %v260_v57 = vmul.f32 %v480_v49, %v583_v0  ;;  %v292_v58 = vadd.f32 %v592_v9, %v253_v50  ;;  %v293_v59 = vadd.f32 %v592_v9, %v254_v51  ;;  %v526_v46 = vld [vmem:[%s578_s18 + $0x70] sm:$0xff]   ;;  %v527_v47 = vld [vmem:[%s578_s18 + $0x78] sm:$0xff]  }
  0x1c   : > { %v294_v60 = vadd.f32 %v592_v9, %v255_v52  ;;  %v295_v61 = vadd.f32 %v592_v9, %v256_v53  ;;  %v296_v62 = vadd.f32 %v592_v9, %v257_v54  ;;  %v297_v63 = vadd.f32 %v592_v9, %v258_v55 }
  0x1d   : > { %v298_v1 = vadd.f32 %v592_v9, %v259_v56  ;;  %v299_v2 = vadd.f32 %v592_v9, %v260_v57  ;;  %v324_v5 = vmax.f32 %v292_v58, 0.0  ;;  %v325_v6 = vmax.f32 %v293_v59, 0.0 }
  0x1e   : > { %v326_v7 = vmax.f32 %v294_v60, 0.0  ;;  %v327_v8 = vmax.f32 %v295_v61, 0.0  ;;  %v328_v12 = vmax.f32 %v296_v62, 0.0  ;;  %v329_v13 = vmax.f32 %v297_v63, 0.0 }
  0x1f   : > { %v330_v14 = vmax.f32 %v298_v1, 0.0  ;;  %v331_v15 = vmax.f32 %v299_v2, 0.0  ;;  %356 = vst [vmem:[%s610_s26 + $0x40] sm:$0xff] %v324_v5  ;;  %357 = vst [vmem:[%s610_s26 + $0x48] sm:$0xff] %v325_v6  ;;  %v487_v18 = vunpack.c.l.bf16 %v521_v4  ;;  %v488_v19 = vunpack.c.h.bf16 %v521_v4 }
  0x20   : > { %358 = vst [vmem:[%s610_s26 + $0x50] sm:$0xff] %v326_v7  ;;  %359 = vst [vmem:[%s610_s26 + $0x58] sm:$0xff] %v327_v8  ;;  %v491_v20 = vunpack.c.l.bf16 %v522_v10  ;;  %v492_v21 = vunpack.c.h.bf16 %v522_v10  ;;  %v495_v22 = vunpack.c.l.bf16 %v523_v11  ;;  %v496_v23 = vunpack.c.h.bf16 %v523_v11 }
  0x21   : > { %360 = vst [vmem:[%s610_s26 + $0x60] sm:$0xff] %v328_v12  ;;  %361 = vst [vmem:[%s610_s26 + $0x68] sm:$0xff] %v329_v13  ;;  %v261_v24 = vmul.f32 %v483_v16, %v583_v0  ;;  %v262_v25 = vmul.f32 %v484_v17, %v583_v0  ;;  %v263_v26 = vmul.f32 %v487_v18, %v583_v0  ;;  %v499_v52 = vunpack.c.l.bf16 %v524_v40 }
  0x22   : > { %362 = vst [vmem:[%s610_s26 + $0x70] sm:$0xff] %v330_v14  ;;  %363 = vst [vmem:[%s610_s26 + $0x78] sm:$0xff] %v331_v15  ;;  %v264_v27 = vmul.f32 %v488_v19, %v583_v0  ;;  %v265_v28 = vmul.f32 %v491_v20, %v583_v0  ;;  %v266_v29 = vmul.f32 %v492_v21, %v583_v0  ;;  %v500_v53 = vunpack.c.h.bf16 %v524_v40 }
  0x23   : > { %v267_v30 = vmul.f32 %v495_v22, %v583_v0  ;;  %v268_v31 = vmul.f32 %v496_v23, %v583_v0  ;;  %v300_v32 = vadd.f32 %v592_v9, %v261_v24  ;;  %v301_v33 = vadd.f32 %v592_v9, %v262_v25 }
  0x24   : > { %v302_v34 = vadd.f32 %v592_v9, %v263_v26  ;;  %v303_v35 = vadd.f32 %v592_v9, %v264_v27  ;;  %v304_v36 = vadd.f32 %v592_v9, %v265_v28  ;;  %v305_v37 = vadd.f32 %v592_v9, %v266_v29 }
  0x25   : > { %v306_v38 = vadd.f32 %v592_v9, %v267_v30  ;;  %v307_v39 = vadd.f32 %v592_v9, %v268_v31  ;;  %v332_v42 = vmax.f32 %v300_v32, 0.0  ;;  %v333_v43 = vmax.f32 %v301_v33, 0.0 }
  0x26   : > { %v334_v44 = vmax.f32 %v302_v34, 0.0  ;;  %v335_v45 = vmax.f32 %v303_v35, 0.0  ;;  %v336_v48 = vmax.f32 %v304_v36, 0.0  ;;  %v337_v49 = vmax.f32 %v305_v37, 0.0 }
  0x27   : > { %v338_v50 = vmax.f32 %v306_v38, 0.0  ;;  %v339_v51 = vmax.f32 %v307_v39, 0.0  ;;  %364 = vst [vmem:[%s610_s26 + $0x80] sm:$0xff] %v332_v42  ;;  %365 = vst [vmem:[%s610_s26 + $0x88] sm:$0xff] %v333_v43  ;;  %v503_v54 = vunpack.c.l.bf16 %v525_v41  ;;  %v504_v55 = vunpack.c.h.bf16 %v525_v41 }
  0x28   : > { %366 = vst [vmem:[%s610_s26 + $0x90] sm:$0xff] %v334_v44  ;;  %367 = vst [vmem:[%s610_s26 + $0x98] sm:$0xff] %v335_v45  ;;  %v507_v56 = vunpack.c.l.bf16 %v526_v46  ;;  %v508_v57 = vunpack.c.h.bf16 %v526_v46  ;;  %v511_v58 = vunpack.c.l.bf16 %v527_v47  ;;  %v512_v59 = vunpack.c.h.bf16 %v527_v47 }
  0x29   : > { %368 = vst [vmem:[%s610_s26 + $0xa0] sm:$0xff] %v336_v48  ;;  %369 = vst [vmem:[%s610_s26 + $0xa8] sm:$0xff] %v337_v49  ;;  %v269_v60 = vmul.f32 %v499_v52, %v583_v0  ;;  %v270_v61 = vmul.f32 %v500_v53, %v583_v0  ;;  %v271_v62 = vmul.f32 %v503_v54, %v583_v0 }
  0x2a   : > { %370 = vst [vmem:[%s610_s26 + $0xb0] sm:$0xff] %v338_v50  ;;  %371 = vst [vmem:[%s610_s26 + $0xb8] sm:$0xff] %v339_v51  ;;  %v272_v63 = vmul.f32 %v504_v55, %v583_v0  ;;  %v273_v1 = vmul.f32 %v507_v56, %v583_v0  ;;  %v274_v2 = vmul.f32 %v508_v57, %v583_v0 }
  0x2b   : > { %v275_v3 = vmul.f32 %v511_v58, %v583_v0  ;;  %v276_v4 = vmul.f32 %v512_v59, %v583_v0  ;;  %v308_v5 = vadd.f32 %v592_v9, %v269_v60  ;;  %v309_v6 = vadd.f32 %v592_v9, %v270_v61 }
  0x2c   : > { %v310_v7 = vadd.f32 %v592_v9, %v271_v62  ;;  %v311_v8 = vadd.f32 %v592_v9, %v272_v63  ;;  %v312_v10 = vadd.f32 %v592_v9, %v273_v1  ;;  %v313_v11 = vadd.f32 %v592_v9, %v274_v2 }
  0x2d   : > { %v314_v0 = vadd.f32 %v592_v9, %v275_v3  ;;  %v315_v12 = vadd.f32 %v592_v9, %v276_v4  ;;  %v340_v13 = vmax.f32 %v308_v5, 0.0  ;;  %v341_v14 = vmax.f32 %v309_v6, 0.0 }
  0x2e   : > { %v342_v15 = vmax.f32 %v310_v7, 0.0  ;;  %v343_v16 = vmax.f32 %v311_v8, 0.0  ;;  %v344_v17 = vmax.f32 %v312_v10, 0.0  ;;  %v345_v18 = vmax.f32 %v313_v11, 0.0 }
  0x2f   : > { %v346_v19 = vmax.f32 %v314_v0, 0.0  ;;  %v347_v20 = vmax.f32 %v315_v12, 0.0  ;;  %372 = vst [vmem:[%s610_s26 + $0xc0] sm:$0xff] %v340_v13  ;;  %373 = vst [vmem:[%s610_s26 + $0xc8] sm:$0xff] %v341_v14 }
  0x30   : > { %374 = vst [vmem:[%s610_s26 + $0xd0] sm:$0xff] %v342_v15  ;;  %375 = vst [vmem:[%s610_s26 + $0xd8] sm:$0xff] %v343_v16 }
  0x31   : > { %376 = vst [vmem:[%s610_s26 + $0xe0] sm:$0xff] %v344_v17  ;;  %377 = vst [vmem:[%s610_s26 + $0xe8] sm:$0xff] %v345_v18 }
  0x32   : > { %378 = vst [vmem:[%s610_s26 + $0xf0] sm:$0xff] %v346_v19  ;;  %379 = vst [vmem:[%s610_s26 + $0xf8] sm:$0xff] %v347_v20 }
  0x33 PF: > { %s13_s12 = sadd.s32 1, %s542_s12  }
  0x34   : > { %p10_p4 = scmp.ge.s32.totalorder %s13_s12, 4  }
  0x36   :  { %12 = sbr.rel (!%p10_p4) target bundleno = 1 (0x1), region = 62 }

// kernel: conv_block_forward.5
= control target key start
LH: loop header
LB: loop body
LE: loop exit
PB: predicated region body
PF: predicated region fallthrough
CT: control target
= control target key end

     0   :  { %s851_s12 = smov 0   ;;  %s985_s0 = inlined_call_operand.vmem [shape: bf16[512,128], index: 0, kind: input, shape index: {}]   ;;  %s986_s1 = inlined_call_operand.vmem [shape: f32[1,128], index: 1, kind: input, shape index: {}]   ;;  %s987_s2 = inlined_call_operand.vmem [shape: f32[1,128], index: 2, kind: input, shape index: {}]   ;;  %s988_s3 = inlined_call_operand.vmem [shape: bf16[512,128], index: 3, kind: output, shape index: {}]  }
   0x1 LB: > { %s564_s13 = sadd.s32 4294967295, %s829_s12   ;;  %p568_p0 = scmp.ge.s32.totalorder %s829_s12, 1  ;;  %s829_s12 = sphi %s851_s12, %s13_s12  }
   0x2   : > { %p138_p1 = scmp.lt.s32.totalorder %s829_s12, 3 }
   0x4   : > { %p139_p2 = pnand %p568_p0, %p138_p1 }
   0x5   : > { %s569_s14 = sshll.u32 (!%p139_p2), %s564_s13, 5 }
   0x6   : > { %142 = sbr.rel (%p139_p2) target bundleno = 57 (0x39), region = 32  ;;  %p163_p3 = scmp.lt.s32.totalorder (!%p139_p2), %s569_s14, 63 }
   0xb   : > { %s990_s14 = smov (!%p163_p3, %s569_s14), 63  ;;  %v872_v0 = vld [vmem:[%s986_s1] ss:$0 sm:$0xff] }
   0xc   : > { %s570_s15 = sshll.u32 %s990_s14, 2  ;;  %v881_v9 = vld [vmem:[%s987_s2] ss:$0 sm:$0xff] }
   0xd   : > { %s867_s18 = scalar_lea.vmem %s985_s0, %s570_s15  ;;  %s906_s25 = scalar_lea.vmem %s988_s3, %s570_s15 }
   0xe   : > { %v642_v1 = vld [vmem:[%s867_s18] sm:$0xff]   ;;  %v785_v2 = vld [vmem:[%s867_s18 + $0x8] sm:$0xff]   ;;  %v786_v3 = vld [vmem:[%s867_s18 + $0x10] sm:$0xff]  }
   0xf   : > { %v643_v4 = vunpack.c.l.bf16 %v642_v1  ;;  %v644_v5 = vunpack.c.h.bf16 %v642_v1  ;;  %v647_v6 = vunpack.c.l.bf16 %v785_v2  ;;  %v648_v7 = vunpack.c.h.bf16 %v785_v2  ;;  %v787_v8 = vld [vmem:[%s867_s18 + $0x18] sm:$0xff]   ;;  %v788_v30 = vld [vmem:[%s867_s18 + $0x20] sm:$0xff]   ;;  %v789_v35 = vld [vmem:[%s867_s18 + $0x28] sm:$0xff]  }
  0x10   : > { %v651_v10 = vunpack.c.l.bf16 %v786_v3  ;;  %v652_v11 = vunpack.c.h.bf16 %v786_v3  ;;  %v655_v12 = vunpack.c.l.bf16 %v787_v8  ;;  %v656_v13 = vunpack.c.h.bf16 %v787_v8  ;;  %v790_v40 = vld [vmem:[%s867_s18 + $0x30] sm:$0xff]   ;;  %v791_v45 = vld [vmem:[%s867_s18 + $0x38] sm:$0xff]   ;;  %v792_v3 = vld [vmem:[%s867_s18 + $0x40] sm:$0xff]  }
  0x11   : > { %v245_v14 = vmul.f32 %v643_v4, %v872_v0  ;;  %v246_v15 = vmul.f32 %v644_v5, %v872_v0  ;;  %v247_v16 = vmul.f32 %v647_v6, %v872_v0  ;;  %v248_v17 = vmul.f32 %v648_v7, %v872_v0 }
  0x12   : > { %v249_v18 = vmul.f32 %v651_v10, %v872_v0  ;;  %v250_v19 = vmul.f32 %v652_v11, %v872_v0  ;;  %v251_v20 = vmul.f32 %v655_v12, %v872_v0  ;;  %v252_v21 = vmul.f32 %v656_v13, %v872_v0  ;;  %v793_v13 = vld [vmem:[%s867_s18 + $0x48] sm:$0xff]  }
  0x13   : > { %v284_v22 = vadd.f32 %v881_v9, %v245_v14  ;;  %v285_v23 = vadd.f32 %v881_v9, %v246_v15  ;;  %v286_v24 = vadd.f32 %v881_v9, %v247_v16  ;;  %v287_v25 = vadd.f32 %v881_v9, %v248_v17 }
  0x14   : > { %v288_v26 = vadd.f32 %v881_v9, %v249_v18  ;;  %v289_v27 = vadd.f32 %v881_v9, %v250_v19  ;;  %v290_v28 = vadd.f32 %v881_v9, %v251_v20  ;;  %v291_v29 = vadd.f32 %v881_v9, %v252_v21  ;;  %v794_v18 = vld [vmem:[%s867_s18 + $0x50] sm:$0xff]  }
  0x15   : > { %v316_v31 = vmax.f32 %v284_v22, 0.0  ;;  %v317_v32 = vmax.f32 %v285_v23, 0.0  ;;  %v318_v33 = vmax.f32 %v286_v24, 0.0  ;;  %v319_v34 = vmax.f32 %v287_v25, 0.0  ;;  %v795_v23 = vld [vmem:[%s867_s18 + $0x58] sm:$0xff]  }
  0x16   : > { %v320_v36 = vmax.f32 %v288_v26, 0.0  ;;  %v321_v37 = vmax.f32 %v289_v27, 0.0  ;;  %v322_v38 = vmax.f32 %v290_v28, 0.0  ;;  %v323_v39 = vmax.f32 %v291_v29, 0.0 }
  0x17   : > { %v708_v41 = vpack.c.bf16 %v317_v32, %v316_v31  ;;  %v713_v42 = vpack.c.bf16 %v319_v34, %v318_v33  ;;  %v659_v43 = vunpack.c.l.bf16 %v788_v30  ;;  %v660_v44 = vunpack.c.h.bf16 %v788_v30 }
  0x18   : > { %v718_v46 = vpack.c.bf16 %v321_v37, %v320_v36  ;;  %v723_v47 = vpack.c.bf16 %v323_v39, %v322_v38  ;;  %v663_v48 = vunpack.c.l.bf16 %v789_v35  ;;  %v664_v49 = vunpack.c.h.bf16 %v789_v35 }
  0x19   : > { %709 = vst [vmem:[%s906_s25] sm:$0xff] %v708_v41   ;;  %800 = vst [vmem:[%s906_s25 + $0x8] sm:$0xff] %v713_v42   ;;  %v253_v50 = vmul.f32 %v659_v43, %v872_v0  ;;  %v254_v51 = vmul.f32 %v660_v44, %v872_v0  ;;  %v667_v52 = vunpack.c.l.bf16 %v790_v40  ;;  %v668_v53 = vunpack.c.h.bf16 %v790_v40  ;;  %v796_v40 = vld [vmem:[%s867_s18 + $0x60] sm:$0xff]  }
  0x1a   : > { %801 = vst [vmem:[%s906_s25 + $0x10] sm:$0xff] %v718_v46   ;;  %802 = vst [vmem:[%s906_s25 + $0x18] sm:$0xff] %v723_v47   ;;  %v255_v54 = vmul.f32 %v663_v48, %v872_v0  ;;  %v256_v55 = vmul.f32 %v664_v49, %v872_v0  ;;  %v671_v56 = vunpack.c.l.bf16 %v791_v45  ;;  %v672_v57 = vunpack.c.h.bf16 %v791_v45 }
  0x1b   : > { %v292_v58 = vadd.f32 %v881_v9, %v253_v50  ;;  %v293_v59 = vadd.f32 %v881_v9, %v254_v51  ;;  %v257_v60 = vmul.f32 %v667_v52, %v872_v0  ;;  %v258_v61 = vmul.f32 %v668_v53, %v872_v0  ;;  %v797_v53 = vld [vmem:[%s867_s18 + $0x68] sm:$0xff]  }
  0x1c   : > { %v294_v62 = vadd.f32 %v881_v9, %v255_v54  ;;  %v295_v63 = vadd.f32 %v881_v9, %v256_v55  ;;  %v259_v1 = vmul.f32 %v671_v56, %v872_v0  ;;  %v260_v2 = vmul.f32 %v672_v57, %v872_v0 }
  0x1d   : > { %v324_v4 = vmax.f32 %v292_v58, 0.0  ;;  %v325_v5 = vmax.f32 %v293_v59, 0.0  ;;  %v296_v6 = vadd.f32 %v881_v9, %v257_v60  ;;  %v297_v7 = vadd.f32 %v881_v9, %v258_v61  ;;  %v798_v58 = vld [vmem:[%s867_s18 + $0x70] sm:$0xff]  }
  0x1e   : > { %v326_v8 = vmax.f32 %v294_v62, 0.0  ;;  %v327_v10 = vmax.f32 %v295_v63, 0.0  ;;  %v298_v11 = vadd.f32 %v881_v9, %v259_v1  ;;  %v299_v12 = vadd.f32 %v881_v9, %v260_v2  ;;  %v799_v63 = vld [vmem:[%s867_s18 + $0x78] sm:$0xff]  }
  0x1f   : > { %v728_v14 = vpack.c.bf16 %v325_v5, %v324_v4  ;;  %v328_v15 = vmax.f32 %v296_v6, 0.0  ;;  %v329_v16 = vmax.f32 %v297_v7, 0.0  ;;  %v675_v17 = vunpack.c.l.bf16 %v792_v3 }
  0x20   : > { %v733_v19 = vpack.c.bf16 %v327_v10, %v326_v8  ;;  %v330_v20 = vmax.f32 %v298_v11, 0.0  ;;  %v331_v21 = vmax.f32 %v299_v12, 0.0  ;;  %v676_v22 = vunpack.c.h.bf16 %v792_v3 }
  0x21   : > { %803 = vst [vmem:[%s906_s25 + $0x20] sm:$0xff] %v728_v14   ;;  %v738_v24 = vpack.c.bf16 %v329_v16, %v328_v15  ;;  %v261_v25 = vmul.f32 %v675_v17, %v872_v0  ;;  %v679_v26 = vunpack.c.l.bf16 %v793_v13  ;;  %v680_v27 = vunpack.c.h.bf16 %v793_v13 }
  0x22   : > { %804 = vst [vmem:[%s906_s25 + $0x28] sm:$0xff] %v733_v19   ;;  %v743_v28 = vpack.c.bf16 %v331_v21, %v330_v20  ;;  %v262_v29 = vmul.f32 %v676_v22, %v872_v0  ;;  %v683_v30 = vunpack.c.l.bf16 %v794_v18  ;;  %v684_v31 = vunpack.c.h.bf16 %v794_v18 }
  0x23   : > { %805 = vst [vmem:[%s906_s25 + $0x30] sm:$0xff] %v738_v24   ;;  %v300_v32 = vadd.f32 %v881_v9, %v261_v25  ;;  %v263_v33 = vmul.f32 %v679_v26, %v872_v0  ;;  %v264_v34 = vmul.f32 %v680_v27, %v872_v0  ;;  %v687_v35 = vunpack.c.l.bf16 %v795_v23 }
  0x24   : > { %806 = vst [vmem:[%s906_s25 + $0x38] sm:$0xff] %v743_v28   ;;  %v301_v36 = vadd.f32 %v881_v9, %v262_v29  ;;  %v265_v37 = vmul.f32 %v683_v30, %v872_v0  ;;  %v266_v38 = vmul.f32 %v684_v31, %v872_v0  ;;  %v688_v39 = vunpack.c.h.bf16 %v795_v23 }
  0x25   : > { %v332_v41 = vmax.f32 %v300_v32, 0.0  ;;  %v302_v42 = vadd.f32 %v881_v9, %v263_v33  ;;  %v303_v43 = vadd.f32 %v881_v9, %v264_v34  ;;  %v267_v44 = vmul.f32 %v687_v35, %v872_v0 }
  0x26   : > { %v333_v45 = vmax.f32 %v301_v36, 0.0  ;;  %v304_v46 = vadd.f32 %v881_v9, %v265_v37  ;;  %v305_v47 = vadd.f32 %v881_v9, %v266_v38  ;;  %v268_v48 = vmul.f32 %v688_v39, %v872_v0 }
  0x27   : > { %v334_v49 = vmax.f32 %v302_v42, 0.0  ;;  %v335_v50 = vmax.f32 %v303_v43, 0.0  ;;  %v306_v51 = vadd.f32 %v881_v9, %v267_v44  ;;  %v691_v52 = vunpack.c.l.bf16 %v796_v40 }
  0x28   : > { %v748_v54 = vpack.c.bf16 %v333_v45, %v332_v41  ;;  %v336_v55 = vmax.f32 %v304_v46, 0.0  ;;  %v337_v56 = vmax.f32 %v305_v47, 0.0  ;;  %v307_v57 = vadd.f32 %v881_v9, %v268_v48 }
  0x29   : > { %v753_v59 = vpack.c.bf16 %v335_v50, %v334_v49  ;;  %v338_v60 = vmax.f32 %v306_v51, 0.0  ;;  %v692_v61 = vunpack.c.h.bf16 %v796_v40  ;;  %v269_v62 = vmul.f32 %v691_v52, %v872_v0 }
  0x2a   : > { %807 = vst [vmem:[%s906_s25 + $0x40] sm:$0xff] %v748_v54   ;;  %v758_v1 = vpack.c.bf16 %v337_v56, %v336_v55  ;;  %v339_v2 = vmax.f32 %v307_v57, 0.0  ;;  %v695_v3 = vunpack.c.l.bf16 %v797_v53  ;;  %v696_v4 = vunpack.c.h.bf16 %v797_v53 }
  0x2b   : > { %808 = vst [vmem:[%s906_s25 + $0x48] sm:$0xff] %v753_v59   ;;  %v270_v5 = vmul.f32 %v692_v61, %v872_v0  ;;  %v308_v6 = vadd.f32 %v881_v9, %v269_v62  ;;  %v699_v7 = vunpack.c.l.bf16 %v798_v58  ;;  %v700_v8 = vunpack.c.h.bf16 %v798_v58 }
  0x2c   : > { %809 = vst [vmem:[%s906_s25 + $0x50] sm:$0xff] %v758_v1   ;;  %v763_v10 = vpack.c.bf16 %v339_v2, %v338_v60  ;;  %v271_v11 = vmul.f32 %v695_v3, %v872_v0  ;;  %v272_v12 = vmul.f32 %v696_v4, %v872_v0  ;;  %v703_v13 = vunpack.c.l.bf16 %v799_v63 }
  0x2d   : > { %v309_v14 = vadd.f32 %v881_v9, %v270_v5  ;;  %v340_v15 = vmax.f32 %v308_v6, 0.0  ;;  %v273_v16 = vmul.f32 %v699_v7, %v872_v0  ;;  %v274_v17 = vmul.f32 %v700_v8, %v872_v0 }
  0x2e   : > { %810 = vst [vmem:[%s906_s25 + $0x58] sm:$0xff] %v763_v10   ;;  %v310_v18 = vadd.f32 %v881_v9, %v271_v11  ;;  %v311_v19 = vadd.f32 %v881_v9, %v272_v12  ;;  %v704_v20 = vunpack.c.h.bf16 %v799_v63  ;;  %v275_v21 = vmul.f32 %v703_v13, %v872_v0 }
  0x2f   : > { %v341_v22 = vmax.f32 %v309_v14, 0.0  ;;  %v312_v23 = vadd.f32 %v881_v9, %v273_v16  ;;  %v313_v24 = vadd.f32 %v881_v9, %v274_v17 }
  0x30   : > { %v342_v25 = vmax.f32 %v310_v18, 0.0  ;;  %v343_v26 = vmax.f32 %v311_v19, 0.0  ;;  %v276_v27 = vmul.f32 %v704_v20, %v872_v0  ;;  %v314_v28 = vadd.f32 %v881_v9, %v275_v21 }
  0x31   : > { %v768_v29 = vpack.c.bf16 %v341_v22, %v340_v15  ;;  %v344_v30 = vmax.f32 %v312_v23, 0.0  ;;  %v345_v31 = vmax.f32 %v313_v24, 0.0 }
  0x32   : > { %v773_v32 = vpack.c.bf16 %v343_v26, %v342_v25  ;;  %v315_v33 = vadd.f32 %v881_v9, %v276_v27  ;;  %v346_v34 = vmax.f32 %v314_v28, 0.0 }
  0x33   : > { %811 = vst [vmem:[%s906_s25 + $0x60] sm:$0xff] %v768_v29   ;;  %v778_v35 = vpack.c.bf16 %v345_v31, %v344_v30 }
  0x34   : > { %812 = vst [vmem:[%s906_s25 + $0x68] sm:$0xff] %v773_v32   ;;  %v347_v36 = vmax.f32 %v315_v33, 0.0 }
  0x35   : > { %813 = vst [vmem:[%s906_s25 + $0x70] sm:$0xff] %v778_v35  }
  0x36   : > { %v783_v37 = vpack.c.bf16 %v347_v36, %v346_v34 }
  0x38   : > { %814 = vst [vmem:[%s906_s25 + $0x78] sm:$0xff] %v783_v37  }
  0x39 PF: > { %s13_s12 = sadd.s32 1, %s829_s12  }
  0x3a   : > { %p10_p4 = scmp.ge.s32.totalorder %s13_s12, 4  }
  0x3c   :  { %12 = sbr.rel (!%p10_p4) target bundleno = 1 (0x1), region = 62 }

// kernel: conv_block_forward.4
= control target key start
LH: loop header
LB: loop body
LE: loop exit
PB: predicated region body
PF: predicated region fallthrough
CT: control target
= control target key end

     0   :  { %s3765_s12 = smov 0   ;;  %s4915_s0 = inlined_call_operand.vmem [shape: bf16[2,16,16,128], index: 0, kind: input, shape index: {}]   ;;  %s4916_s1 = inlined_call_operand.vmem [shape: bf16[3,384,128], index: 1, kind: input, shape index: {}]   ;;  %s4917_s2 = inlined_call_operand.vmem [shape: bf16[512,128], index: 2, kind: output, shape index: {0}]   ;;  %s4918_s3 = inlined_call_operand.vmem [shape: f32[2,2,128], index: 3, kind: output, shape index: {1}]  }
   0x1 LB: > { %s3771_s13 = sadd.s32 4294967295, %s3742_s12   ;;  %p2715_p0 = scmp.ge.s32.totalorder %s3742_s12, 1  ;;  %s3742_s12 = sphi %s3765_s12, %s14_s12  }
   0x2   : > { %p140_p1 = scmp.lt.s32.totalorder %s3742_s12, 3 }
   0x4   : > { %p141_p2 = pnand %p2715_p0, %p140_p1 }
   0x6   : > { %144 = sbr.rel (%p141_p2) target bundleno = 549 (0x225), region = 28 }
   0xb   : > { %v3645_v0 = vld [vmem:[%s4916_s1 + $0x78] sm:$0xff]   ;;  %v3647_v2 = vld [vmem:[%s4916_s1 + $0x70] sm:$0xff]   ;;  %p168_p3 = scmp.lt.s32.totalorder %s3771_s13, 1  ;;  %v3649_v4 = vld [vmem:[%s4916_s1 + $0x68] sm:$0xff]   ;;  %vm460_vm0 = vcmask 1040384   ;;  %v3744_v23 = vmov 0  }
   0xc   : > { %v3646_v1 = vld [vmem:[%s4916_s1 + $0x38] sm:$0xff]   ;;  %3068 = vmatprep.subr.bf16.mxu0 %v3645_v0  ;;  %3620 = vmatprep.subr.bf16.mxu1 %v3645_v0  ;;  %v3648_v3 = vld [vmem:[%s4916_s1 + $0x30] sm:$0xff]   ;;  %v3650_v5 = vld [vmem:[%s4916_s1 + $0x28] sm:$0xff]   ;;  %vm461_vm1 = vsmask.f32 256  ;;  %v319_v24 = vrot.slane %v3744_v23, 7 }
   0xd   : > { %3069 = vmatpush3.bf16.msra.mxu0 %v3646_v1  ;;  %3628 = vmatpush3.bf16.msra.mxu1 %v3646_v1  ;;  %s3792_s24 = scalar_select %p168_p3, %s3771_s13, 1  ;;  %v3651_v6 = vld [vmem:[%s4916_s1 + $0x60] sm:$0xff]   ;;  %v3653_v8 = vld [vmem:[%s4916_s1 + $0x58] sm:$0xff]   ;;  %v3655_v10 = vld [vmem:[%s4916_s1 + $0x50] sm:$0xff]   ;;  %vm535_vm3 = vcmask 1047552  }
   0xe   : > { %3070 = vmatprep.subr.bf16.mxu0 %v3647_v2  ;;  %3621 = vmatprep.subr.bf16.mxu1 %v3647_v2  ;;  %v3652_v7 = vld [vmem:[%s4916_s1 + $0x20] sm:$0xff]   ;;  %v3654_v9 = vld [vmem:[%s4916_s1 + $0x18] sm:$0xff]   ;;  %v3656_v12 = vld [vmem:[%s4916_s1 + $0x10] sm:$0xff]   ;;  %vm536_vm4 = vsmask.f32 7424 }
   0xf   : > { %s2940_s29 = sshll.u32 %s3792_s24, 7  ;;  %v3657_v17 = vld [vmem:[%s4916_s1 + $0x48] sm:$0xff]   ;;  %vm3844_vm2 = vmand %vm460_vm0, %vm461_vm1  ;;  %v3659_v29 = vld [vmem:[%s4916_s1 + $0x40] sm:$0xff]   ;;  %s2720_s27 = sshll.u32 %s3792_s24, 1 }
  0x10   : > { %s3810_s9 = scalar_lea.vmem %s4915_s0, %s2940_s29  ;;  %v3658_v21 = vld [vmem:[%s4916_s1 + $0x8] sm:$0xff]   ;;  %v3660_v35 = vld [vmem:[%s4916_s1] sm:$0xff]   ;;  %v463_v40 = vsel %vm3844_vm2, 0, %v319_v24  ;;  %v3664_v41 = vld [vmem:[%s4916_s1 + $0xb8] sm:$0xff]   ;;  %s182_s30 = scalar_lea.vmem %s4918_s3, %s2720_s27 }
  0x11   : > { %3071 = vmatpush3.bf16.msra.mxu0 %v3648_v3  ;;  %3629 = vmatpush3.bf16.msra.mxu1 %v3648_v3  ;;  %v3819_v11 = vld [vmem:[%s3810_s9] sm:$0xff]   ;;  %v3830_v16 = vld [vmem:[%s3810_s9 + $0x58] sm:$0xff]   ;;  %v3867_v33 = vld [vmem:[%s3810_s9 + $0x8] sm:$0xff]  }
  0x12   : > { %3072 = vmatprep.subr.bf16.mxu0 %v3649_v4  ;;  %3622 = vmatprep.subr.bf16.mxu1 %v3649_v4  ;;  %v324_v13 = vshrl.u32 %v3819_v11, 16  ;;  %v327_v14 = vshll.u32 %v3819_v11, 16  ;;  %v3827_v15 = vld [vmem:[%s3810_s9 + $0x60] sm:$0xff]   ;;  %v401_v25 = vshrl.u32 %v3830_v16, 16  ;;  %v404_v28 = vshll.u32 %v3830_v16, 16  ;;  %v3871_v34 = vld [vmem:[%s3810_s9 + $0x68] sm:$0xff]   ;;  %vm4314_vm5 = vmand %vm535_vm3, %vm536_vm4 }
  0x13   : > { %v408_v19 = vshrl.u32 %v3827_v15, 16  ;;  %v411_v20 = vshll.u32 %v3827_v15, 16  ;;  %v331_v38 = vshrl.u32 %v3867_v33, 16  ;;  %v334_v39 = vshll.u32 %v3867_v33, 16  ;;  %v3665_v44 = vld [vmem:[%s4916_s1 + $0x178] sm:$0xff]   ;;  %v3900_v47 = vld [vmem:[%s3810_s9 + $0x10] sm:$0xff]  }
  0x14   : > { %v326_v18 = vrot.slane %v324_v13, 7  ;;  %v403_v30 = vrot.slane %v401_v25, 7  ;;  %v415_v42 = vshrl.u32 %v3871_v34, 16  ;;  %v418_v43 = vshll.u32 %v3871_v34, 16  ;;  %v3909_v50 = vld [vmem:[%s3810_s9 + $0x70] sm:$0xff]   ;;  %v3934_v61 = vld [vmem:[%s3810_s9 + $0x18] sm:$0xff]  }
  0x15   : > { %3073 = vmatpush3.bf16.msra.mxu0 %v3650_v5  ;;  %3630 = vmatpush3.bf16.msra.mxu1 %v3650_v5  ;;  %v410_v27 = vrot.slane %v408_v19, 7  ;;  %v333_v45 = vrot.slane %v331_v38, 7  ;;  %v338_v52 = vshrl.u32 %v3900_v47, 16  ;;  %v341_v53 = vshll.u32 %v3900_v47, 16  ;;  %v3666_v54 = vld [vmem:[%s4916_s1 + $0xb0] sm:$0xff]   ;;  %v3940_v63 = vld [vmem:[%s3810_s9 + $0x78] sm:$0xff]  }
  0x16   : > { %3074 = vmatprep.subr.bf16.mxu0 %v3651_v6  ;;  %3623 = vmatprep.subr.bf16.mxu1 %v3651_v6  ;;  %v329_v26 = vor.u32 %v327_v14, %v326_v18  ;;  %v406_v37 = vor.u32 %v404_v28, %v403_v30  ;;  %v417_v46 = vrot.slane %v415_v42, 7  ;;  %v3671_v56 = vld [vmem:[%s4916_s1 + $0x170] sm:$0xff]   ;;  %v422_v57 = vshrl.u32 %v3909_v50, 16  ;;  %v3669_v2 = vld [vmem:[%s4916_s1 + $0xa8] sm:$0xff]   ;;  %v3670_v6 = vld [vmem:[%s4916_s1 + $0xa0] sm:$0xff]  }
  0x17   : > { %v413_v32 = vor.u32 %v411_v20, %v410_v27  ;;  %v336_v49 = vor.u32 %v334_v39, %v333_v45  ;;  %v340_v59 = vrot.slane %v338_v52, 7  ;;  %v425_v60 = vshll.u32 %v3909_v50, 16  ;;  %v3679_v5 = vld [vmem:[%s4916_s1 + $0x168] sm:$0xff]   ;;  %v3674_v24 = vld [vmem:[%s4916_s1 + $0x98] sm:$0xff]   ;;  %v3713_v22 = vld [vmem:[%s4916_s1 + $0x1b0] sm:$0xff]  }
  0x18   : > { %v3862_v31 = vsel %vm3844_vm2, 0, %v329_v26  ;;  %v3904_v48 = vsel %vm3844_vm2, 0, %v406_v37  ;;  %v420_v51 = vor.u32 %v418_v43, %v417_v46  ;;  %v424_v62 = vrot.slane %v422_v57, 7  ;;  %v3992_v30 = vld [vmem:[%s3810_s9 + $0x28] sm:$0xff]  }
  0x19   : > { %3075 = vmatpush3.bf16.msra.mxu0 %v3652_v7  ;;  %3631 = vmatpush3.bf16.msra.mxu1 %v3652_v7  ;;  %v3878_v36 = vsel %vm3844_vm2, 0, %v413_v32  ;;  %v3920_v55 = vsel %vm3844_vm2, 0, %v336_v49  ;;  %v343_v0 = vor.u32 %v341_v53, %v340_v59  ;;  %v345_v1 = vshrl.u32 %v3934_v61, 16  ;;  %v3678_v45 = vld [vmem:[%s4916_s1 + $0x88] sm:$0xff]   ;;  %v4027_v59 = vld [vmem:[%s3810_s9 + $0x30] sm:$0xff]  }
  0x1a   : > { %3076 = vmatprep.subr.bf16.mxu0 %v3653_v8  ;;  %3624 = vmatprep.subr.bf16.mxu1 %v3653_v8  ;;  %v3928_v58 = vsel %vm3844_vm2, 0, %v420_v51  ;;  %v429_v3 = vshrl.u32 %v3940_v63, 16  ;;  %v427_v4 = vor.u32 %v425_v60, %v424_v62  ;;  %v348_v7 = vshll.u32 %v3934_v61, 16  ;;  %v3696_v62 = vld [vmem:[%s4916_s1 + $0x150] sm:$0xff]  }
  0x1b   : > { %780 = vmatprep.mubr.bf16.mxu0 %v3862_v31  ;;  %876 = vmatprep.mubr.bf16.mxu1 %v3878_v36  ;;  %v432_v8 = vshll.u32 %v3940_v63, 16  ;;  %v362_v51 = vshll.u32 %v3992_v30, 16 }
  0x1c   : > { %v3974_v18 = vsel %vm3844_vm2, 0, %v427_v4  ;;  %v366_v4 = vshrl.u32 %v4027_v59, 16 }
  0x1d   : > { %3077 = vmatpush3.bf16.msra.mxu0 %v3654_v9  ;;  %3632 = vmatpush3.bf16.msra.mxu1 %v3654_v9  ;;  %v3963_v9 = vsel %vm3844_vm2, 0, %v343_v0 }
  0x1e   : > { %3078 = vmatprep.subr.bf16.mxu0 %v3655_v10  ;;  %3625 = vmatprep.subr.bf16.mxu1 %v3655_v10  ;;  %v347_v10 = vrot.slane %v345_v1, 7 }
  0x20   : > { %v350_v26 = vor.u32 %v348_v7, %v347_v10 }
  0x21   : > { %3079 = vmatpush3.bf16.msra.mxu0 %v3656_v12  ;;  %3633 = vmatpush3.bf16.msra.mxu1 %v3656_v12  ;;  %v431_v12 = vrot.slane %v429_v3, 7 }
  0x22   : > { %3080 = vmatprep.subr.bf16.mxu0 %v3657_v17  ;;  %3626 = vmatprep.subr.bf16.mxu1 %v3657_v17  ;;  %v3970_v17 = vld [vmem:[%s3810_s9 + $0x20] sm:$0xff]   ;;  %v467_v32 = vsel %vm3844_vm2, 0, %v350_v26  ;;  %v3703_v26 = vld [vmem:[%s4916_s1 + $0x148] sm:$0xff]  }
  0x23   : > { %v434_v27 = vor.u32 %v432_v8, %v431_v12  ;;  %v4051_v12 = vld [vmem:[%s3810_s9 + $0x38] sm:$0xff]  }
  0x25   : > { %3081 = vmatpush3.bf16.msra.mxu0 %v3658_v21  ;;  %3634 = vmatpush3.bf16.msra.mxu1 %v3658_v21  ;;  %v3684_v21 = vld [vmem:[%s4916_s1 + $0x160] sm:$0xff]  }
  0x26   : > { %3082 = vmatprep.subr.bf16.mxu0 %v3659_v29  ;;  %3627 = vmatprep.subr.bf16.mxu1 %v3659_v29  ;;  %v352_v29 = vshrl.u32 %v3970_v17, 16 }
  0x28   : > { %v354_v37 = vrot.slane %v352_v29, 7 }
  0x29   : > { %3083 = vmatpush3.bf16.msra.mxu0 %v3660_v35  ;;  %3635 = vmatpush3.bf16.msra.mxu1 %v3660_v35  ;;  %v4001_v35 = vsel %vm3844_vm2, 0, %v434_v27  ;;  %v3687_v27 = vld [vmem:[%s4916_s1 + $0xf0] sm:$0xff]  }
  0x2a   : > { %3476 = vmatprep.subr.bf16.mxu1 %v3664_v41  ;;  %3524 = vmatprep.subr.bf16.mxu0 %v3665_v44 }
  0x2c   : > { %781 = vmatmul.mubr.bf16.vlgmr.msra.gmra.mxu0 %v463_v40  ;;  %877 = vmatmul.mubr.bf16.vlgmr.msra.gmra.mxu1 %v3904_v48  ;;  %v355_v40 = vshll.u32 %v3970_v17, 16 }
  0x2d   : > { %3477 = vmatpush3.bf16.msra.mxu1 %v3664_v41  ;;  %3525 = vmatpush3.bf16.msra.mxu0 %v3665_v44  ;;  %v359_v41 = vshrl.u32 %v3992_v30, 16  ;;  %v3691_v44 = vld [vmem:[%s4916_s1 + $0x158] sm:$0xff]  }
  0x2e   : > { %3478 = vmatprep.subr.bf16.mxu1 %v3666_v54  ;;  %788 = vmatprep.mubr.bf16.mxu0 %v3920_v55  ;;  %v357_v46 = vor.u32 %v355_v40, %v354_v37  ;;  %v3706_v37 = vld [vmem:[%s4916_s1 + $0x140] sm:$0xff]  }
  0x2f   : > { %884 = vmatprep.mubr.bf16.mxu1 %v3928_v58  ;;  %3526 = vmatprep.subr.bf16.mxu0 %v3671_v56  ;;  %v361_v49 = vrot.slane %v359_v41, 7 }
  0x31   : > { %3479 = vmatpush3.bf16.msra.mxu1 %v3666_v54  ;;  %3527 = vmatpush3.bf16.msra.mxu0 %v3671_v56  ;;  %v3680_v54 = vld [vmem:[%s4916_s1 + $0x80] sm:$0xff]   ;;  %v468_v56 = vsel %vm3844_vm2, 0, %v357_v46  ;;  %v364_v0 = vor.u32 %v362_v51, %v361_v49  ;;  %v376_v46 = vshll.u32 %v4051_v12, 16 }
  0x32   : > { %3480 = vmatprep.subr.bf16.mxu1 %v3669_v2  ;;  %3528 = vmatprep.subr.bf16.mxu0 %v3679_v5 }
  0x33   : > { %v469_v10 = vsel %vm3844_vm2, 0, %v364_v0  ;;  %v4098_v0 = vld [vmem:[%s3810_s9 + $0x48] sm:$0xff]  }
  0x34   : > { %789 = vmatmul.mubr.bf16.gmra.mxu0 %v3862_v31  ;;  %885 = vmatmul.mubr.bf16.gmra.mxu1 %v3878_v36  ;;  %v3675_v31 = vld [vmem:[%s4916_s1 + $0x90] sm:$0xff]  }
  0x35   : > { %3481 = vmatpush3.bf16.msra.mxu1 %v3669_v2  ;;  %796 = vmatprep.mubr.bf16.mxu0 %v3963_v9  ;;  %v3682_v2 = vld [vmem:[%s4916_s1 + $0x138] sm:$0xff]  }
  0x36   : > { %3482 = vmatprep.subr.bf16.mxu1 %v3670_v6  ;;  %892 = vmatprep.mubr.bf16.mxu1 %v3974_v18 }
  0x37   : > { %3529 = vmatpush3.bf16.msra.mxu0 %v3679_v5  ;;  %v3683_v5 = vld [vmem:[%s4916_s1 + $0xf8] sm:$0xff]  }
  0x38   : > { %3530 = vmatprep.subr.bf16.mxu0 %v3684_v21 }
  0x39   : > { %3483 = vmatpush3.bf16.msra.mxu1 %v3670_v6  ;;  %v369_v6 = vshll.u32 %v4027_v59, 16 }
  0x3a   : > { %3484 = vmatprep.subr.bf16.mxu1 %v3674_v24 }
  0x3b   : > { %3531 = vmatpush3.bf16.msra.mxu0 %v3684_v21  ;;  %v368_v21 = vrot.slane %v366_v4, 7 }
  0x3c   : > { %797 = vmatmul.mubr.bf16.gmra.mxu0 %v3920_v55  ;;  %893 = vmatmul.mubr.bf16.gmra.mxu1 %v3928_v58 }
  0x3d   : > { %3485 = vmatpush3.bf16.msra.mxu1 %v3674_v24  ;;  %804 = vmatprep.mubr.bf16.mxu0 %v467_v32  ;;  %v483_v24 = vrot.slane %v327_v14, 1  ;;  %v373_v14 = vshrl.u32 %v4051_v12, 16 }
  0x3e   : > { %3486 = vmatprep.subr.bf16.mxu1 %v3675_v31  ;;  %900 = vmatprep.mubr.bf16.mxu1 %v4001_v35 }
  0x3f   : > { %3532 = vmatprep.subr.bf16.mxu0 %v3691_v44  ;;  %v375_v49 = vrot.slane %v373_v14, 7 }
  0x40   : > { %3533 = vmatpush3.bf16.msra.mxu0 %v3691_v44  ;;  %v3689_v44 = vld [vmem:[%s4916_s1 + $0x128] sm:$0xff]  }
  0x41   : > { %3487 = vmatpush3.bf16.msra.mxu1 %v3675_v31  ;;  %3534 = vmatprep.subr.bf16.mxu0 %v3696_v62  ;;  %v4066_v31 = vor.u32 %v483_v24, %v324_v13  ;;  %v485_v13 = vrot.slane %v334_v39, 1  ;;  %v387_v24 = vshrl.u32 %v4098_v0, 16 }
  0x42   : > { %3488 = vmatprep.subr.bf16.mxu1 %v3678_v45 }
  0x43   : > { %v4093_v39 = vor.u32 %v485_v13, %v331_v38  ;;  %v378_v38 = vor.u32 %v376_v46, %v375_v49  ;;  %v389_v13 = vrot.slane %v387_v24, 7 }
  0x44   : > { %805 = vmatmul.mubr.bf16.gmra.mxu0 %v3963_v9  ;;  %901 = vmatmul.mubr.bf16.gmra.mxu1 %v3974_v18 }
  0x45   : > { %3489 = vmatpush3.bf16.msra.mxu1 %v3678_v45  ;;  %812 = vmatprep.mubr.bf16.mxu0 %v468_v56  ;;  %v3690_v45 = vld [vmem:[%s4916_s1 + $0xe8] sm:$0xff]  }
  0x46   : > { %3490 = vmatprep.subr.bf16.mxu1 %v3680_v54  ;;  %3492 = vmatprep.mubr.bf16.mxu1 %v3920_v55  ;;  %v3686_v55 = vld [vmem:[%s4916_s1 + $0x130] sm:$0xff]  }
  0x47   : > { %3535 = vmatpush3.bf16.msra.mxu0 %v3696_v62 }
  0x48   : > { %3536 = vmatprep.subr.bf16.mxu0 %v3703_v26 }
  0x49   : > { %3491 = vmatpush3.bf16.msra.mxu1 %v3680_v54  ;;  %v3694_v54 = vld [vmem:[%s4916_s1 + $0x120] sm:$0xff]  }
  0x4a   : > { %3204 = vmatprep.subr.bf16.mxu1 %v3682_v2  ;;  %v3710_v2 = vld [vmem:[%s4916_s1 + $0x1f8] sm:$0xff]  }
  0x4b   : > { %3537 = vmatpush3.bf16.msra.mxu0 %v3703_v26  ;;  %v3699_v26 = vld [vmem:[%s4916_s1 + $0x118] sm:$0xff]  }
  0x4c   : > { %813 = vmatmul.mubr.bf16.gmra.mxu0 %v467_v32  ;;  %3493 = vmatmul.mubr.bf16.vlgmr.msra.gmra.mxu1 %v3963_v9  ;;  %v371_v9 = vor.u32 %v369_v6, %v368_v21  ;;  %v3695_v21 = vld [vmem:[%s4916_s1 + $0xe0] sm:$0xff]  }
  0x4d   : > { %3205 = vmatpush3.bf16.msra.mxu1 %v3683_v5  ;;  %820 = vmatprep.mubr.bf16.mxu0 %v469_v10 }
  0x4e   : > { %3496 = vmatprep.mubr.bf16.mxu1 %v467_v32  ;;  %3206 = vmatprep.subr.bf16.mxu1 %v3686_v55  ;;  %v4084_v32 = vld [vmem:[%s3810_s9 + $0x40] sm:$0xff]   ;;  %v470_v62 = vsel %vm3844_vm2, 0, %v371_v9  ;;  %v487_v55 = vrot.slane %v341_v53, 1  ;;  %v4123_v9 = vld [vmem:[%s3810_s9 + $0x50] sm:$0xff]  }
  0x4f   : > { %3538 = vmatprep.subr.bf16.mxu0 %v3706_v37  ;;  %v380_v5 = vshrl.u32 %v4084_v32, 16 }
  0x50   : > { %3539 = vmatpush3.bf16.msra.mxu0 %v3706_v37  ;;  %v471_v37 = vsel %vm3844_vm2, 0, %v378_v38 }
  0x51   : > { %3207 = vmatpush3.bf16.msra.mxu1 %v3687_v27  ;;  %3340 = vmatprep.subr.bf16.mxu0 %v3710_v2  ;;  %v4118_v27 = vor.u32 %v487_v55, %v338_v52  ;;  %v382_v53 = vrot.slane %v380_v5, 7  ;;  %v3701_v52 = vld [vmem:[%s4916_s1 + $0x110] sm:$0xff]   ;;  %v489_v2 = vrot.slane %v348_v7, 1 }
  0x52   : > { %3208 = vmatprep.subr.bf16.mxu1 %v3689_v44  ;;  %v390_v44 = vshll.u32 %v4098_v0, 16  ;;  %v3702_v55 = vld [vmem:[%s4916_s1 + $0xd0] sm:$0xff]  }
  0x54   : > { %821 = vmatmul.mubr.bf16.gmra.mxu0 %v468_v56  ;;  %3497 = vmatmul.mubr.bf16.gmra.mxu1 %v468_v56  ;;  %v383_v56 = vshll.u32 %v4084_v32, 16  ;;  %v392_v38 = vor.u32 %v390_v44, %v389_v13 }
  0x55   : > { %828 = vmatprep.mubr.bf16.mxu0 %v470_v62  ;;  %3500 = vmatprep.mubr.bf16.mxu1 %v469_v10 }
  0x56   : > { %3209 = vmatpush3.bf16.msra.mxu1 %v3690_v45  ;;  %v3700_v45 = vld [vmem:[%s4916_s1 + $0xd8] sm:$0xff]   ;;  %v385_v49 = vor.u32 %v383_v56, %v382_v53  ;;  %v397_v53 = vshll.u32 %v4123_v9, 16  ;;  %v473_v13 = vsel %vm3844_vm2, 0, %v392_v38  ;;  %v491_v38 = vrot.slane %v355_v40, 1 }
  0x57   : > { %3210 = vmatprep.subr.bf16.mxu1 %v3694_v54  ;;  %v394_v54 = vshrl.u32 %v4123_v9, 16 }
  0x58   : > { %v472_v7 = vsel %vm3844_vm2, 0, %v385_v49  ;;  %v3708_v49 = vld [vmem:[%s4916_s1 + $0xc0] sm:$0xff]  }
  0x5a   : > { %3211 = vmatpush3.bf16.msra.mxu1 %v3695_v21  ;;  %v4151_v21 = vor.u32 %v489_v2, %v345_v1  ;;  %v3707_v1 = vld [vmem:[%s4916_s1 + $0x100] sm:$0xff]   ;;  %v3709_v2 = vld [vmem:[%s4916_s1 + $0x238] sm:$0xff]  }
  0x5b   : > { %3212 = vmatprep.subr.bf16.mxu1 %v3699_v26  ;;  %v396_v26 = vrot.slane %v394_v54, 7 }
  0x5c   : > { %829 = vmatmul.mubr.bf16.gmra.mxu0 %v469_v10  ;;  %3501 = vmatmul.mubr.bf16.gmra.mxu1 %v470_v62  ;;  %v3704_v10 = vld [vmem:[%s4916_s1 + $0x108] sm:$0xff]  }
  0x5d   : > { %836 = vmatprep.mubr.bf16.mxu0 %v471_v37  ;;  %3504 = vmatprep.mubr.bf16.mxu1 %v471_v37 }
  0x5e   : > { %3213 = vmatpush3.bf16.msra.mxu1 %v3700_v45  ;;  %v3705_v45 = vld [vmem:[%s4916_s1 + $0xc8] sm:$0xff]  }
  0x5f   : > { %3214 = vmatprep.subr.bf16.mxu1 %v3701_v52  ;;  %v399_v52 = vor.u32 %v397_v53, %v396_v26  ;;  %v495_v26 = vrot.slane %v369_v6, 1 }
  0x62   : > { %3215 = vmatpush3.bf16.msra.mxu1 %v3702_v55  ;;  %v474_v55 = vsel %vm3844_vm2, 0, %v399_v52  ;;  %v3718_v52 = vld [vmem:[%s4916_s1 + $0x1a0] sm:$0xff]  }
  0x63   : > { %3216 = vmatprep.subr.bf16.mxu1 %v3704_v10  ;;  %v493_v10 = vrot.slane %v362_v51, 1  ;;  %v4200_v51 = vor.u32 %v495_v26, %v366_v4  ;;  %v3725_v26 = vld [vmem:[%s4916_s1 + $0x1c8] sm:$0xff]  }
  0x64   : > { %837 = vmatmul.mubr.bf16.gmra.mxu0 %v470_v62  ;;  %3505 = vmatmul.mubr.bf16.gmra.mxu1 %v472_v7  ;;  %v4178_v62 = vor.u32 %v491_v38, %v352_v29  ;;  %v4191_v29 = vcombine.low %v3744_v23, %v3744_v23  ;;  %v3722_v38 = vld [vmem:[%s4916_s1 + $0x1d0] sm:$0xff]  }
  0x65   : > { %844 = vmatprep.mubr.bf16.mxu0 %v472_v7  ;;  %3508 = vmatprep.mubr.bf16.mxu1 %v473_v13  ;;  %v4187_v40 = vor.u32 %v493_v10, %v359_v41  ;;  %v3723_v10 = vld [vmem:[%s4916_s1 + $0x190] sm:$0xff]  }
  0x66   : > { %3217 = vmatpush3.bf16.msra.mxu1 %v3705_v45  ;;  %v439_v45 = vshll.u32 %v4191_v29, 16 }
  0x67   : > { %3218 = vmatprep.subr.bf16.mxu1 %v3707_v1  ;;  %v3724_v1 = vld [vmem:[%s4916_s1 + $0x220] sm:$0xff]  }
  0x6a   : > { %3219 = vmatpush3.bf16.msra.mxu1 %v3708_v49  ;;  %v3720_v49 = vld [vmem:[%s4916_s1 + $0x1d8] sm:$0xff]  }
  0x6b   : > { %3572 = vmatprep.subr.bf16.mxu1 %v3709_v2 }
  0x6c   : > { %845 = vmatmul.mubr.bf16.gmra.mxu0 %v471_v37  ;;  %3509 = vmatmul.mubr.bf16.gmra.mxu1 %v474_v55  ;;  %v436_v37 = vshrl.u32 %v4191_v29, 16 }
  0x6d   : > { %852 = vmatprep.mubr.bf16.mxu0 %v473_v13  ;;  %3512 = vmatprep.mubr.bf16.mxu1 %v3904_v48 }
  0x6e   : > { %v438_v41 = vrot.slane %v436_v37, 7 }
  0x74   : > { %853 = vmatmul.mubr.bf16.gmra.mxu0 %v472_v7  ;;  %3513 = vmatmul.mubr.bf16.gmra.mxu1 %v3878_v36  ;;  %v441_v36 = vor.u32 %v439_v45, %v438_v41  ;;  %v3716_v7 = vld [vmem:[%s4916_s1 + $0x1a8] sm:$0xff]  }
  0x75   : > { %860 = vmatprep.mubr.bf16.mxu0 %v474_v55  ;;  %3516 = vmatprep.mubr.bf16.mxu1 %v3928_v58  ;;  %v497_v58 = vrot.slane %v376_v46, 1  ;;  %v3719_v46 = vld [vmem:[%s4916_s1 + $0x228] sm:$0xff]  }
  0x76   : > { %v480_v6 = vsel %vm3844_vm2, 0, %v441_v36  ;;  %v3726_v41 = vld [vmem:[%s4916_s1 + $0x188] sm:$0xff]   ;;  %v3727_v36 = vld [vmem:[%s4916_s1 + $0x1c0] sm:$0xff]  }
  0x77   : > { %v4214_v4 = vor.u32 %v497_v58, %v373_v14  ;;  %v3715_v14 = vld [vmem:[%s4916_s1 + $0x1e8] sm:$0xff]   ;;  %v3732_v58 = vld [vmem:[%s4916_s1 + $0x200] sm:$0xff]  }
  0x7c   : > { %861 = vmatmul.mubr.bf16.gmra.mxu0 %v473_v13  ;;  %3517 = vmatmul.mubr.bf16.gmra.mxu1 %v3974_v18  ;;  %v3712_v18 = vld [vmem:[%s4916_s1 + $0x1f0] sm:$0xff]   ;;  %v3717_v13 = vld [vmem:[%s4916_s1 + $0x1e0] sm:$0xff]  }
  0x7d   : > { %868 = vmatprep.mubr.bf16.mxu0 %v3904_v48  ;;  %3520 = vmatprep.mubr.bf16.mxu1 %v4001_v35  ;;  %v3711_v48 = vld [vmem:[%s4916_s1 + $0x1b8] sm:$0xff]   ;;  %v3714_v35 = vld [vmem:[%s4916_s1 + $0x230] sm:$0xff]  }
  0x84   : > { %869 = vmatmul.mubr.bf16.gmra.mxu0 %v474_v55  ;;  %3521 = vmatmul.mubr.bf16.gmra.mxu1 %v480_v6  ;;  %v3730_v55 = vld [vmem:[%s4916_s1 + $0x210] sm:$0xff]   ;;  %v3728_v6 = vld [vmem:[%s4916_s1 + $0x180] sm:$0xff]  }
  0x85   : > { %1359 = vmatprep.mubr.bf16.mxu1 %v3819_v11  ;;  %3540 = vmatprep.mubr.bf16.mxu0 %v3867_v33 }
  0x8c   : > { %1360 = vmatmul.mubr.bf16.vlgmr.msra.gmra.mxu1 %v3744_v23  ;;  %3541 = vmatmul.mubr.bf16.vlgmr.msra.gmra.mxu0 %v3900_v47 }
  0x8d   : > { %3573 = vmatpush3.bf16.msra.mxu1 %v3709_v2  ;;  %3341 = vmatpush3.bf16.msra.mxu0 %v3711_v48  ;;  %v3721_v2 = vld [vmem:[%s4916_s1 + $0x198] sm:$0xff]   ;;  %v4330_v48 = vsel %vm4314_vm5, %v4093_v39, 0  ;;  %v4364_v39 = vsel %vm4314_vm5, %v4187_v40, 0 }
  0x8e   : > { %1367 = vmatprep.mubr.bf16.mxu1 %v3867_v33  ;;  %3544 = vmatprep.mubr.bf16.mxu0 %v3934_v61 }
  0x8f   : > { %3342 = vmatprep.subr.bf16.mxu0 %v3712_v18  ;;  %3574 = vmatprep.subr.bf16.mxu1 %v3714_v35  ;;  %v3734_v18 = vld [vmem:[%s3810_s9 + $0x58] sm:$0xff]  }
  0x91   : > { %3343 = vmatpush3.bf16.msra.mxu0 %v3713_v22  ;;  %3575 = vmatpush3.bf16.msra.mxu1 %v3714_v35 }
  0x92   : > { %3344 = vmatprep.subr.bf16.mxu0 %v3715_v14  ;;  %3576 = vmatprep.subr.bf16.mxu1 %v3719_v46 }
  0x94   : > { %1368 = vmatmul.mubr.bf16.gmra.mxu1 %v3819_v11  ;;  %3545 = vmatmul.mubr.bf16.gmra.mxu0 %v3970_v17  ;;  %v3729_v11 = vld [vmem:[%s4916_s1 + $0x218] sm:$0xff]  }
  0x95   : > { %1375 = vmatprep.mubr.bf16.mxu1 %v3900_v47  ;;  %3548 = vmatprep.mubr.bf16.mxu0 %v3992_v30 }
  0x96   : > { %3345 = vmatpush3.bf16.msra.mxu0 %v3716_v7  ;;  %3577 = vmatpush3.bf16.msra.mxu1 %v3719_v46 }
  0x97   : > { %3346 = vmatprep.subr.bf16.mxu0 %v3717_v13  ;;  %3578 = vmatprep.subr.bf16.mxu1 %v3724_v1 }
  0x9a   : > { %3347 = vmatpush3.bf16.msra.mxu0 %v3718_v52  ;;  %3579 = vmatpush3.bf16.msra.mxu1 %v3724_v1  ;;  %v4377_v1 = vsel %vm4314_vm5, %v4200_v51, 0 }
  0x9b   : > { %3348 = vmatprep.subr.bf16.mxu0 %v3720_v49  ;;  %3580 = vmatprep.subr.bf16.mxu1 %v3729_v11 }
  0x9c   : > { %1376 = vmatmul.mubr.bf16.gmra.mxu1 %v3867_v33  ;;  %3549 = vmatmul.mubr.bf16.gmra.mxu0 %v4027_v59  ;;  %v3731_v33 = vld [vmem:[%s4916_s1 + $0x208] sm:$0xff]  }
  0x9d   : > { %1383 = vmatprep.mubr.bf16.mxu1 %v3934_v61  ;;  %3552 = vmatprep.mubr.bf16.mxu0 %v4051_v12 }
  0x9e   : > { %3349 = vmatpush3.bf16.msra.mxu0 %v3721_v2  ;;  %3581 = vmatpush3.bf16.msra.mxu1 %v3729_v11 }
  0x9f   : > { %3350 = vmatprep.subr.bf16.mxu0 %v3722_v38  ;;  %3582 = vmatprep.subr.bf16.mxu1 %v3730_v55 }
  0xa2   : > { %3351 = vmatpush3.bf16.msra.mxu0 %v3723_v10  ;;  %3583 = vmatpush3.bf16.msra.mxu1 %v3730_v55 }
  0xa3   : > { %3352 = vmatprep.subr.bf16.mxu0 %v3725_v26  ;;  %3584 = vmatprep.subr.bf16.mxu1 %v3731_v33 }
  0xa4   : > { %1384 = vmatmul.mubr.bf16.gmra.mxu1 %v3900_v47  ;;  %3553 = vmatmul.mubr.bf16.gmra.mxu0 %v4084_v32 }
  0xa5   : > { %1391 = vmatprep.mubr.bf16.mxu1 %v3970_v17  ;;  %3556 = vmatprep.mubr.bf16.mxu0 %v4098_v0 }
  0xa6   : > { %3353 = vmatpush3.bf16.msra.mxu0 %v3726_v41  ;;  %3585 = vmatpush3.bf16.msra.mxu1 %v3731_v33 }
  0xa7   : > { %3354 = vmatprep.subr.bf16.mxu0 %v3727_v36  ;;  %3586 = vmatprep.subr.bf16.mxu1 %v3732_v58 }
  0xaa   : > { %3355 = vmatpush3.bf16.msra.mxu0 %v3728_v6  ;;  %3587 = vmatpush3.bf16.msra.mxu1 %v3732_v58  ;;  %v4391_v58 = vsel %vm4314_vm5, %v4214_v4, 0  ;;  %v499_v6 = vrot.slane %v383_v56, 1 }
  0xac   : > { %1392 = vmatmul.mubr.bf16.gmra.mxu1 %v3934_v61  ;;  %3557 = vmatmul.mubr.bf16.gmra.mxu0 %v4123_v9  ;;  %v539_v61 = vsel %vm4314_vm5, %v4066_v31, 0  ;;  %v3733_v31 = vld [vmem:[%s3810_s9 + $0x60] sm:$0xff]   ;;  %v500_v4 = vor.u32 %v499_v6, %v380_v5 }
  0xad   : > { %1399 = vmatprep.mubr.bf16.mxu1 %v3992_v30  ;;  %3560 = vmatprep.mubr.bf16.mxu0 %v3830_v16 }
  0xb4   : > { %1400 = vmatmul.mubr.bf16.gmra.mxu1 %v3970_v17  ;;  %3561 = vmatmul.mubr.bf16.gmra.mxu0 %v3827_v15  ;;  %v481_v17 = vrot.slane %v3744_v23, 1  ;;  %v4338_v23 = vsel %vm4314_vm5, %v4118_v27, 0 }
  0xb5   : > { %1407 = vmatprep.mubr.bf16.mxu1 %v4027_v59  ;;  %3564 = vmatprep.mubr.bf16.mxu0 %v3871_v34 }
  0xbc   : > { %1408 = vmatmul.mubr.bf16.gmra.mxu1 %v3992_v30  ;;  %3565 = vmatmul.mubr.bf16.gmra.mxu0 %v3909_v50  ;;  %v538_v30 = vsel %vm4314_vm5, %v481_v17, 0 }
  0xbd   : > { %1415 = vmatprep.mubr.bf16.mxu1 %v4051_v12  ;;  %3568 = vmatprep.mubr.bf16.mxu0 %v3940_v63 }
  0xc4   : > { %1416 = vmatmul.mubr.bf16.gmra.mxu1 %v4027_v59  ;;  %3569 = vmatmul.mubr.bf16.gmra.mxu0 %v4191_v29  ;;  %v4346_v59 = vsel %vm4314_vm5, %v4151_v21, 0 }
  0xc5   : > { %1423 = vmatprep.mubr.bf16.mxu1 %v4084_v32  ;;  %1970 = vmatprep.mubr.bf16.mxu0 %v539_v61 }
  0xcc   : > { %1424 = vmatmul.mubr.bf16.gmra.mxu1 %v4051_v12  ;;  %1971 = vmatmul.mubr.bf16.vlgmr.msra.gmra.mxu0 %v538_v30  ;;  %v4355_v12 = vsel %vm4314_vm5, %v4178_v62, 0 }
  0xcd   : > { %1431 = vmatprep.mubr.bf16.mxu1 %v4098_v0  ;;  %1978 = vmatprep.mubr.bf16.mxu0 %v4330_v48 }
  0xd4   : > { %1432 = vmatmul.mubr.bf16.gmra.mxu1 %v4084_v32  ;;  %1979 = vmatmul.mubr.bf16.gmra.mxu0 %v539_v61 }
  0xd5   : > { %1439 = vmatprep.mubr.bf16.mxu1 %v4123_v9  ;;  %1986 = vmatprep.mubr.bf16.mxu0 %v4338_v23 }
  0xdc   : > { %1440 = vmatmul.mubr.bf16.gmra.mxu1 %v4098_v0  ;;  %1987 = vmatmul.mubr.bf16.gmra.mxu0 %v4330_v48 }
  0xdd   : > { %1447 = vmatprep.mubr.bf16.mxu1 %v3830_v16  ;;  %1994 = vmatprep.mubr.bf16.mxu0 %v4346_v59 }
  0xe4   : > { %1448 = vmatmul.mubr.bf16.gmra.mxu1 %v4123_v9  ;;  %1995 = vmatmul.mubr.bf16.gmra.mxu0 %v4338_v23 }
  0xe5   : > { %1455 = vmatprep.mubr.bf16.mxu1 %v3733_v31  ;;  %2002 = vmatprep.mubr.bf16.mxu0 %v4355_v12 }
  0xec   : > { %v3084_v27 = vpop.f32.mrf.mxu0  ;;  %v3156_v21 = vpop.f32.mrf.mxu1  ;;  %1456 = vmatmul.mubr.bf16.gmra.mxu1 %v3734_v18  ;;  %2003 = vmatmul.mubr.bf16.gmra.mxu0 %v4346_v59 }
  0xed   : > { %1463 = vmatprep.mubr.bf16.mxu1 %v3871_v34  ;;  %2010 = vmatprep.mubr.bf16.mxu0 %v4364_v39 }
  0xee   : > { %v3085_v62 = vpop.f32.mrf.mxu0  ;;  %v3157_v35 = vpop.f32.mrf.mxu1 }
  0xef   : > { %v4370_v22 = vadd.f32 %v3085_v62, %v3084_v27  ;;  %v4372_v14 = vadd.f32 %v3157_v35, %v3156_v21  ;;  %v3735_v27 = vld [vmem:[%s3810_s9 + $0x68] sm:$0xff]   ;;  %s2718_s9 = sshll.u32 %s3771_s13, 5 }
  0xf0   : > { %v3087_v46 = vpop.f32.mrf.mxu0  ;;  %v3159_v7 = vpop.f32.mrf.mxu1  ;;  %p174_p4 = scmp.lt.s32.totalorder %s2718_s9, 63 }
  0xf2   : > { %v3088_v40 = vpop.f32.mrf.mxu0  ;;  %v3160_v13 = vpop.f32.mrf.mxu1  ;;  %s4952_s9 = smov (!%p174_p4, %s2718_s9), 63 }
  0xf3   : > { %v4379_v52 = vadd.f32 %v3088_v40, %v3087_v46  ;;  %v4381_v49 = vadd.f32 %v3160_v13, %v3159_v7  ;;  %v4407_v13 = vsel %vm4314_vm5, %v500_v4, 0  ;;  %s2719_s13 = sshll.u32 %s4952_s9, 2 }
  0xf4   : > { %v3090_v11 = vpop.f32.mrf.mxu0  ;;  %v3162_v2 = vpop.f32.mrf.mxu1  ;;  %1464 = vmatmul.mubr.bf16.gmra.mxu1 %v3733_v31  ;;  %2011 = vmatmul.mubr.bf16.gmra.mxu0 %v4355_v12  ;;  %s4788_s26 = scalar_lea.vmem %s4917_s2, %s2719_s13 }
  0xf5   : > { %1471 = vmatprep.mubr.bf16.mxu1 %v3909_v50  ;;  %2018 = vmatprep.mubr.bf16.mxu0 %v4377_v1 }
  0xf6   : > { %v3091_v38 = vpop.f32.mrf.mxu0  ;;  %v3163_v55 = vpop.f32.mrf.mxu1 }
  0xf7   : > { %v3092_v10 = vadd.f32 %v3091_v38, %v3090_v11  ;;  %v4386_v26 = vadd.f32 %v3163_v55, %v3162_v2  ;;  %v501_v11 = vrot.slane %v390_v44, 1 }
  0xf8   : > { %v3093_v51 = vpop.f32.mrf.mxu0  ;;  %v3165_v33 = vpop.f32.mrf.mxu1 }
  0xfa   : > { %v3094_v41 = vpop.f32.mrf.mxu0  ;;  %v3166_v36 = vpop.f32.mrf.mxu1 }
  0xfb   : > { %v3095_v61 = vadd.f32 %v3094_v41, %v3093_v51  ;;  %v4395_v17 = vadd.f32 %v3166_v36, %v3165_v33  ;;  %v502_v33 = vor.u32 %v501_v11, %v387_v24 }
  0xfc   : > { %v3096_v30 = vpop.f32.mrf.mxu0  ;;  %v3168_v31 = vpop.f32.mrf.mxu1  ;;  %1472 = vmatmul.mubr.bf16.gmra.mxu1 %v3735_v27  ;;  %2019 = vmatmul.mubr.bf16.gmra.mxu0 %v4364_v39 }
  0xfd   : > { %1479 = vmatprep.mubr.bf16.mxu1 %v3940_v63  ;;  %2026 = vmatprep.mubr.bf16.mxu0 %v4391_v58  ;;  %v4423_v27 = vsel %vm4314_vm5, %v502_v33, 0 }
  0xfe   : > { %v3097_v21 = vpop.f32.mrf.mxu0  ;;  %v3169_v18 = vpop.f32.mrf.mxu1 }
  0xff   : > { %v3098_v62 = vadd.f32 %v3097_v21, %v3096_v30  ;;  %v4403_v56 = vadd.f32 %v3169_v18, %v3168_v31  ;;  %v503_v21 = vrot.slane %v397_v53, 1 }
 0x100   : > { %v3099_v35 = vpop.f32.mrf.mxu0  ;;  %v3171_v46 = vpop.f32.mrf.mxu1 }
 0x101   : > { %v504_v53 = vor.u32 %v503_v21, %v394_v54 }
 0x102   : > { %v3100_v7 = vpop.f32.mrf.mxu0  ;;  %v3172_v40 = vpop.f32.mrf.mxu1 }
 0x103   : > { %v3101_v2 = vadd.f32 %v3100_v7, %v3099_v35  ;;  %v4411_v38 = vadd.f32 %v3172_v40, %v3171_v46 }
 0x104   : > { %v3102_v55 = vpop.f32.mrf.mxu0  ;;  %v3174_v32 = vpop.f32.mrf.mxu1  ;;  %1480 = vmatmul.mubr.bf16.gmra.mxu1 %v3909_v50  ;;  %2027 = vmatmul.mubr.bf16.gmra.mxu0 %v4377_v1 }
 0x105   : > { %2034 = vmatprep.mubr.bf16.mxu0 %v4407_v13  ;;  %3588 = vmatprep.mubr.bf16.mxu1 %v4330_v48 }
 0x106   : > { %v3103_v5 = vpop.f32.mrf.mxu0  ;;  %v3175_v51 = vpop.f32.mrf.mxu1 }
 0x107   : > { %v3104_v41 = vadd.f32 %v3103_v5, %v3102_v55  ;;  %v4419_v44 = vadd.f32 %v3175_v51, %v3174_v32  ;;  %v4444_v5 = vsel %vm4314_vm5, %v504_v53, 0 }
 0x108   : > { %v3105_v36 = vpop.f32.mrf.mxu0  ;;  %v3177_v6 = vpop.f32.mrf.mxu1 }
 0x10a   : > { %v3106_v30 = vpop.f32.mrf.mxu0  ;;  %v3178_v31 = vpop.f32.mrf.mxu1 }
 0x10b   : > { %v3107_v48 = vadd.f32 %v3106_v30, %v3105_v36  ;;  %v4427_v18 = vadd.f32 %v3178_v31, %v3177_v6 }
 0x10c   : > { %v3108_v4 = vpop.f32.mrf.mxu0  ;;  %v3494_v0 = vpop.f32.mrf.mxu1  ;;  %2035 = vmatmul.mubr.bf16.gmra.mxu0 %v4391_v58  ;;  %3589 = vmatmul.mubr.bf16.vlgmr.msra.gmra.mxu1 %v4338_v23 }
 0x10d   : > { %v4431_v24 = vadd.f32 %v3494_v0, %v3092_v10  ;;  %2042 = vmatprep.mubr.bf16.mxu0 %v4423_v27  ;;  %3592 = vmatprep.mubr.bf16.mxu1 %v4346_v59  ;;  %v505_v59 = vrot.slane %v404_v28, 1 }
 0x10e   : > { %v3109_v35 = vpop.f32.mrf.mxu0  ;;  %v943_v46 = vpop.f32.mrf.mxu1 }
 0x10f   : > { %v3110_v7 = vadd.f32 %v3109_v35, %v3108_v4  ;;  %v4438_v40 = vadd.f32 %v4370_v22, %v943_v46  ;;  %v506_v28 = vor.u32 %v505_v59, %v401_v25 }
 0x110   : > { %v3111_v11 = vpop.f32.mrf.mxu0  ;;  %v3495_v55 = vpop.f32.mrf.mxu1 }
 0x111   : > { %v4440_v32 = vadd.f32 %v3495_v55, %v3095_v61 }
 0x112   : > { %v3112_v23 = vpop.f32.mrf.mxu0  ;;  %v946_v10 = vpop.f32.mrf.mxu1 }
 0x113   : > { %v3113_v51 = vadd.f32 %v3112_v23, %v3111_v11  ;;  %v4449_v9 = vadd.f32 %v4379_v52, %v946_v10 }
 0x114   : > { %v3114_v54 = vpop.f32.mrf.mxu0  ;;  %v3498_v22 = vpop.f32.mrf.mxu1  ;;  %2043 = vmatmul.mubr.bf16.gmra.mxu0 %v4407_v13  ;;  %3593 = vmatmul.mubr.bf16.gmra.mxu1 %v4355_v12 }
 0x115   : > { %v4453_v61 = vadd.f32 %v3498_v22, %v3104_v41  ;;  %2050 = vmatprep.mubr.bf16.mxu0 %v4444_v5  ;;  %3596 = vmatprep.mubr.bf16.mxu1 %v4364_v39  ;;  %v550_v41 = vsel %vm4314_vm5, %v506_v28, 0  ;;  %v507_v39 = vrot.slane %v411_v20, 1 }
 0x116   : > { %v3115_v33 = vpop.f32.mrf.mxu0  ;;  %v959_v36 = vpop.f32.mrf.mxu1 }
 0x117   : > { %v3116_v6 = vadd.f32 %v3115_v33, %v3114_v54  ;;  %v4459_v52 = vadd.f32 %v3098_v62, %v959_v36  ;;  %v508_v53 = vor.u32 %v507_v39, %v408_v19 }
 0x118   : > { %v3117_v30 = vpop.f32.mrf.mxu0  ;;  %v3499_v31 = vpop.f32.mrf.mxu1 }
 0x119   : > { %v4461_v21 = vadd.f32 %v3499_v31, %v3107_v48 }
 0x11a   : > { %v3118_v4 = vpop.f32.mrf.mxu0  ;;  %v962_v12 = vpop.f32.mrf.mxu1 }
 0x11b   : > { %v3119_v0 = vadd.f32 %v3118_v4, %v3117_v30  ;;  %v4467_v35 = vadd.f32 %v3101_v2, %v962_v12 }
 0x11c   : > { %v3120_v16 = vpop.f32.mrf.mxu0  ;;  %v3502_v25 = vpop.f32.mrf.mxu1  ;;  %2051 = vmatmul.mubr.bf16.gmra.mxu0 %v4423_v27  ;;  %3597 = vmatmul.mubr.bf16.gmra.mxu1 %v4377_v1  ;;  %v551_v1 = vsel %vm4314_vm5, %v508_v53, 0 }
 0x11d   : > { %v4471_v62 = vadd.f32 %v3502_v25, %v3116_v6  ;;  %2058 = vmatprep.mubr.bf16.mxu0 %v550_v41  ;;  %3600 = vmatprep.mubr.bf16.mxu1 %v4391_v58  ;;  %v509_v58 = vrot.slane %v418_v43, 1 }
 0x11e   : > { %v3121_v48 = vpop.f32.mrf.mxu0  ;;  %v975_v46 = vpop.f32.mrf.mxu1 }
 0x11f   : > { %v3122_v20 = vadd.f32 %v3121_v48, %v3120_v16  ;;  %v4476_v11 = vadd.f32 %v3110_v7, %v975_v46  ;;  %v510_v36 = vor.u32 %v509_v58, %v415_v42 }
 0x120   : > { %v3123_v2 = vpop.f32.mrf.mxu0  ;;  %v3503_v55 = vpop.f32.mrf.mxu1 }
 0x121   : > { %v4478_v23 = vadd.f32 %v3503_v55, %v3119_v0 }
 0x122   : > { %v3124_v10 = vpop.f32.mrf.mxu0  ;;  %v978_v59 = vpop.f32.mrf.mxu1 }
 0x123   : > { %v3125_v54 = vadd.f32 %v3124_v10, %v3123_v2  ;;  %v4484_v22 = vadd.f32 %v3113_v51, %v978_v59 }
 0x124   : > { %v3126_v15 = vpop.f32.mrf.mxu0  ;;  %v3506_v19 = vpop.f32.mrf.mxu1  ;;  %2059 = vmatmul.mubr.bf16.gmra.mxu0 %v4444_v5  ;;  %3601 = vmatmul.mubr.bf16.gmra.mxu1 %v4407_v13  ;;  %v552_v13 = vsel %vm4314_vm5, %v510_v36, 0 }
 0x125   : > { %2066 = vmatprep.mubr.bf16.mxu0 %v551_v1  ;;  %3604 = vmatprep.mubr.bf16.mxu1 %v4423_v27  ;;  %v511_v27 = vrot.slane %v425_v60, 1 }
 0x126   : > { %v3127_v7 = vpop.f32.mrf.mxu0  ;;  %v991_v33 = vpop.f32.mrf.mxu1 }
 0x127   : > { %v3128_v28 = vadd.f32 %v3127_v7, %v3126_v15  ;;  %v4491_v6 = vadd.f32 %v3122_v20, %v991_v33  ;;  %v512_v48 = vor.u32 %v511_v27, %v422_v57 }
 0x128   : > { %v3129_v43 = vpop.f32.mrf.mxu0  ;;  %v3507_v51 = vpop.f32.mrf.mxu1 }
 0x129   : > { %v4493_v30 = vadd.f32 %v3506_v19, %v3128_v28  ;;  %v553_v10 = vsel %vm4314_vm5, %v512_v48, 0 }
 0x12a   : > { %v3130_v31 = vpop.f32.mrf.mxu0  ;;  %v994_v4 = vpop.f32.mrf.mxu1 }
 0x12b   : > { %v3131_v12 = vadd.f32 %v3130_v31, %v3129_v43  ;;  %v4499_v39 = vadd.f32 %v3125_v54, %v994_v4 }
 0x12c   : > { %v3132_v34 = vpop.f32.mrf.mxu0  ;;  %v3510_v42 = vpop.f32.mrf.mxu1  ;;  %2067 = vmatmul.mubr.bf16.gmra.mxu0 %v550_v41  ;;  %3605 = vmatmul.mubr.bf16.gmra.mxu1 %v4444_v5  ;;  %v513_v5 = vrot.slane %v432_v8, 1  ;;  %v515_v8 = vrot.slane %v439_v45, 1 }
 0x12d   : > { %v4502_v0 = vadd.f32 %v3507_v51, %v3131_v12  ;;  %2074 = vmatprep.mubr.bf16.mxu0 %v552_v13  ;;  %3608 = vmatprep.mubr.bf16.mxu1 %v550_v41 }
 0x12e   : > { %v3133_v16 = vpop.f32.mrf.mxu0  ;;  %v1007_v25 = vpop.f32.mrf.mxu1  ;;  %v514_v15 = vor.u32 %v513_v5, %v429_v3  ;;  %v516_v45 = vor.u32 %v515_v8, %v436_v37 }
 0x12f   : > { %v3134_v46 = vadd.f32 %v3133_v16, %v3132_v34 }
 0x130   : > { %v3135_v53 = vpop.f32.mrf.mxu0  ;;  %v3511_v60 = vpop.f32.mrf.mxu1 }
 0x131   : > { %v4506_v20 = vadd.f32 %v3134_v46, %v1007_v25 }
 0x132   : > { %v3136_v2 = vpop.f32.mrf.mxu0  ;;  %v1010_v55 = vpop.f32.mrf.mxu1 }
 0x133   : > { %v3137_v59 = vadd.f32 %v3136_v2, %v3135_v53 }
 0x134   : > { %v3138_v41 = vpop.f32.mrf.mxu0  ;;  %v3514_v58 = vpop.f32.mrf.mxu1  ;;  %2075 = vmatmul.mubr.bf16.gmra.mxu0 %v551_v1  ;;  %3609 = vmatmul.mubr.bf16.gmra.mxu1 %v551_v1  ;;  %v554_v1 = vsel %vm4314_vm5, %v514_v15, 0 }
 0x135   : > { %v4512_v50 = vadd.f32 %v3137_v59, %v1010_v55  ;;  %2082 = vmatprep.mubr.bf16.mxu0 %v553_v10  ;;  %3612 = vmatprep.mubr.bf16.mxu1 %v552_v13 }
 0x136   : > { %v3139_v57 = vpop.f32.mrf.mxu0  ;;  %v1023_v54 = vpop.f32.mrf.mxu1 }
 0x137   : > { %v3140_v19 = vadd.f32 %v3139_v57, %v3138_v41 }
 0x138   : > { %v3141_v7 = vpop.f32.mrf.mxu0  ;;  %v3515_v33 = vpop.f32.mrf.mxu1 }
 0x139   : > { %v4516_v36 = vadd.f32 %v3510_v42, %v3140_v19 }
 0x13a   : > { %v3142_v28 = vpop.f32.mrf.mxu0  ;;  %v1026_v43 = vpop.f32.mrf.mxu1 }
 0x13b   : > { %v3143_v51 = vadd.f32 %v3142_v28, %v3141_v7 }
 0x13c   : > { %v3144_v31 = vpop.f32.mrf.mxu0  ;;  %v3518_v4 = vpop.f32.mrf.mxu1  ;;  %2083 = vmatmul.mubr.bf16.gmra.mxu0 %v552_v13  ;;  %3613 = vmatmul.mubr.bf16.gmra.mxu1 %v553_v10 }
 0x13d   : > { %v4522_v63 = vadd.f32 %v3511_v60, %v3143_v51  ;;  %v4525_v3 = vadd.f32 %v3518_v4, %v4386_v26  ;;  %2090 = vmatprep.mubr.bf16.mxu0 %v554_v1  ;;  %3616 = vmatprep.mubr.bf16.mxu1 %v554_v1  ;;  %v555_v26 = vsel %vm4314_vm5, %v516_v45, 0 }
 0x13e   : > { %v3145_v27 = vpop.f32.mrf.mxu0  ;;  %v1039_v12 = vpop.f32.mrf.mxu1 }
 0x13f   : > { %v3146_v34 = vadd.f32 %v3145_v27, %v3144_v31  ;;  %v4530_v42 = vadd.f32 %v4372_v14, %v1039_v12 }
 0x140   : > { %v3147_v16 = vpop.f32.mrf.mxu0  ;;  %v3519_v25 = vpop.f32.mrf.mxu1 }
 0x141   : > { %v4532_v13 = vadd.f32 %v3146_v34, %v1023_v54  ;;  %v4535_v48 = vadd.f32 %v3519_v25, %v4395_v17 }
 0x142   : > { %v3148_v46 = vpop.f32.mrf.mxu0  ;;  %v1042_v53 = vpop.f32.mrf.mxu1 }
 0x143   : > { %v3149_v29 = vadd.f32 %v3148_v46, %v3147_v16  ;;  %v4540_v37 = vadd.f32 %v4381_v49, %v1042_v53 }
 0x144   : > { %v3150_v60 = vpop.f32.mrf.mxu0  ;;  %v3522_v2 = vpop.f32.mrf.mxu1  ;;  %2091 = vmatmul.mubr.bf16.gmra.mxu0 %v553_v10  ;;  %3617 = vmatmul.mubr.bf16.gmra.mxu1 %v555_v26 }
 0x145   : > { %v4542_v14 = vadd.f32 %v3149_v29, %v1026_v43  ;;  %v4545_v55 = vadd.f32 %v3522_v2, %v4419_v44 }
 0x146   : > { %v3151_v17 = vpop.f32.mrf.mxu0  ;;  %v1055_v5 = vpop.f32.mrf.mxu1 }
 0x147   : > { %v3152_v59 = vadd.f32 %v3151_v17, %v3150_v60  ;;  %v4548_v47 = vadd.f32 %v4403_v56, %v1055_v5 }
 0x148   : > { %v3153_v41 = vpop.f32.mrf.mxu0  ;;  %v3523_v57 = vpop.f32.mrf.mxu1 }
 0x149   : > { %v4550_v54 = vadd.f32 %v3514_v58, %v3152_v59  ;;  %v4553_v49 = vadd.f32 %v3523_v57, %v4427_v18 }
 0x14a   : > { %v3154_v10 = vpop.f32.mrf.mxu0  ;;  %v1058_v15 = vpop.f32.mrf.mxu1 }
 0x14b   : > { %v3155_v19 = vadd.f32 %v3154_v10, %v3153_v41  ;;  %v4556_v7 = vadd.f32 %v4411_v38, %v1058_v15 }
 0x14c   : > { %v3220_v44 = vpop.f32.mrf.mxu1  ;;  %v3542_v8 = vpop.f32.mrf.mxu0 }
 0x14d   : > { %v4558_v28 = vadd.f32 %v3515_v33, %v3155_v19 }
 0x14e   : > { %v3221_v43 = vpop.f32.mrf.mxu1  ;;  %v1522_v56 = vpop.f32.mrf.mxu0 }
 0x14f   : > { %v3222_v1 = vadd.f32 %v3221_v43, %v3220_v44 }
 0x150   : > { %v3223_v51 = vpop.f32.mrf.mxu1  ;;  %v3543_v31 = vpop.f32.mrf.mxu0 }
 0x151   : > { %v1523_v58 = vadd.f32 %v3222_v1, %v1522_v56 }
 0x152   : > { %v3224_v4 = vpop.f32.mrf.mxu1  ;;  %v1525_v45 = vpop.f32.mrf.mxu0 }
 0x153   : > { %v4561_v18 = vadd.f32 %v1523_v58, %v4438_v40  ;;  %v3225_v27 = vadd.f32 %v3224_v4, %v3223_v51 }
 0x154   : > { %v3226_v12 = vpop.f32.mrf.mxu1  ;;  %v3546_v34 = vpop.f32.mrf.mxu0 }
 0x155   : > { %v1526_v38 = vadd.f32 %v3225_v27, %v1525_v45 }
 0x156   : > { %v3227_v16 = vpop.f32.mrf.mxu1  ;;  %v1538_v25 = vpop.f32.mrf.mxu0 }
 0x157   : > { %v4564_v33 = vadd.f32 %v1526_v38, %v4449_v9  ;;  %v3228_v26 = vadd.f32 %v3227_v16, %v3226_v12 }
 0x158   : > { %v3229_v46 = vpop.f32.mrf.mxu1  ;;  %v3547_v53 = vpop.f32.mrf.mxu0 }
 0x159   : > { %v1531_v29 = vadd.f32 %v3542_v8, %v3228_v26 }
 0x15a   : > { %v3230_v60 = vpop.f32.mrf.mxu1  ;;  %v1541_v2 = vpop.f32.mrf.mxu0 }
 0x15b   : > { %v3231_v17 = vadd.f32 %v3230_v60, %v3229_v46  ;;  %v4567_v5 = vadd.f32 %v1531_v29, %v4431_v24 }
 0x15c   : > { %v3232_v40 = vpop.f32.mrf.mxu1  ;;  %v3550_v59 = vpop.f32.mrf.mxu0 }
 0x15d   : > { %v1534_v41 = vadd.f32 %v3543_v31, %v3231_v17 }
 0x15e   : > { %v3233_v57 = vpop.f32.mrf.mxu1  ;;  %v1554_v10 = vpop.f32.mrf.mxu0 }
 0x15f   : > { %v3234_v15 = vadd.f32 %v3233_v57, %v3232_v40  ;;  %v4570_v19 = vadd.f32 %v1534_v41, %v4440_v32 }
 0x160   : > { %v3235_v9 = vpop.f32.mrf.mxu1  ;;  %v3551_v44 = vpop.f32.mrf.mxu0 }
 0x161   : > { %v1539_v43 = vadd.f32 %v3234_v15, %v1538_v25 }
 0x162   : > { %v3236_v56 = vpop.f32.mrf.mxu1  ;;  %v1557_v8 = vpop.f32.mrf.mxu0 }
 0x163   : > { %v3237_v1 = vadd.f32 %v3236_v56, %v3235_v9  ;;  %v4573_v51 = vadd.f32 %v1539_v43, %v4459_v52 }
 0x164   : > { %v3238_v24 = vpop.f32.mrf.mxu1  ;;  %v4575_v58 = vpop.f32.mrf.mxu0 }
 0x165   : > { %v1542_v4 = vadd.f32 %v3237_v1, %v1541_v2 }
 0x166   : > { %v3239_v31 = vpop.f32.mrf.mxu1  ;;  %v1570_v45 = vpop.f32.mrf.mxu0 }
 0x167   : > { %v3240_v27 = vadd.f32 %v3239_v31, %v3238_v24  ;;  %v4578_v12 = vadd.f32 %v1542_v4, %v4467_v35 }
 0x168   : > { %v3241_v32 = vpop.f32.mrf.mxu1  ;;  %v4580_v38 = vpop.f32.mrf.mxu0 }
 0x169   : > { %v1547_v16 = vadd.f32 %v3546_v34, %v3240_v27 }
 0x16a   : > { %v3242_v25 = vpop.f32.mrf.mxu1  ;;  %v1573_v26 = vpop.f32.mrf.mxu0 }
 0x16b   : > { %v3243_v46 = vadd.f32 %v3242_v25, %v3241_v32  ;;  %v4583_v52 = vadd.f32 %v1547_v16, %v4453_v61 }
 0x16c   : > { %v3244_v29 = vpop.f32.mrf.mxu1  ;;  %v4585_v60 = vpop.f32.mrf.mxu0 }
 0x16d   : > { %v1550_v2 = vadd.f32 %v3547_v53, %v3243_v46 }
 0x16e   : > { %v3245_v17 = vpop.f32.mrf.mxu1  ;;  %v1586_v40 = vpop.f32.mrf.mxu0 }
 0x16f   : > { %v3246_v41 = vadd.f32 %v3245_v17, %v3244_v29  ;;  %v4588_v35 = vadd.f32 %v1550_v2, %v4461_v21 }
 0x170   : > { %v3247_v57 = vpop.f32.mrf.mxu1  ;;  %v4590_v15 = vpop.f32.mrf.mxu0 }
 0x171   : > { %v1555_v34 = vadd.f32 %v3246_v41, %v1554_v10 }
 0x172   : > { %v3248_v9 = vpop.f32.mrf.mxu1  ;;  %v1589_v43 = vpop.f32.mrf.mxu0 }
 0x173   : > { %v3249_v56 = vadd.f32 %v3248_v9, %v3247_v57  ;;  %v4593_v61 = vadd.f32 %v1555_v34, %v4476_v11 }
 0x174   : > { %v3250_v1 = vpop.f32.mrf.mxu1  ;;  %v4595_v24 = vpop.f32.mrf.mxu0 }
 0x175   : > { %v1558_v53 = vadd.f32 %v3249_v56, %v1557_v8 }
 0x176   : > { %v3251_v4 = vpop.f32.mrf.mxu1  ;;  %v4597_v31 = vpop.f32.mrf.mxu0 }
 0x177   : > { %v3252_v27 = vadd.f32 %v3251_v4, %v3250_v1  ;;  %v4600_v21 = vadd.f32 %v1558_v53, %v4484_v22 }
 0x178   : > { %v3253_v32 = vpop.f32.mrf.mxu1  ;;  %v4602_v16 = vpop.f32.mrf.mxu0 }
 0x179   : > { %v1563_v10 = vadd.f32 %v3550_v59, %v3252_v27 }
 0x17a   : > { %v3254_v25 = vpop.f32.mrf.mxu1  ;;  %v4604_v46 = vpop.f32.mrf.mxu0 }
 0x17b   : > { %v3255_v11 = vadd.f32 %v3254_v25, %v3253_v32  ;;  %v4607_v29 = vadd.f32 %v1563_v10, %v4471_v62 }
 0x17c   : > { %v3256_v2 = vpop.f32.mrf.mxu1  ;;  %v4609_v8 = vpop.f32.mrf.mxu0 }
 0x17d   : > { %v1566_v17 = vadd.f32 %v3551_v44, %v3255_v11 }
 0x17e   : > { %v3257_v41 = vpop.f32.mrf.mxu1  ;;  %v4611_v57 = vpop.f32.mrf.mxu0 }
 0x17f   : > { %v3258_v22 = vadd.f32 %v3257_v41, %v3256_v2  ;;  %v4614_v34 = vadd.f32 %v1566_v17, %v4478_v23 }
 0x180   : > { %v3259_v9 = vpop.f32.mrf.mxu1  ;;  %v4616_v59 = vpop.f32.mrf.mxu0 }
 0x181   : > { %v1571_v56 = vadd.f32 %v3258_v22, %v1570_v45 }
 0x182   : > { %v3260_v1 = vpop.f32.mrf.mxu1  ;;  %v4618_v53 = vpop.f32.mrf.mxu0 }
 0x183   : > { %v3261_v62 = vadd.f32 %v3260_v1, %v3259_v9  ;;  %v4621_v4 = vadd.f32 %v1571_v56, %v4491_v6 }
 0x184   : > { %v3262_v27 = vpop.f32.mrf.mxu1  ;;  %v4623_v44 = vpop.f32.mrf.mxu0 }
 0x185   : > { %v1574_v32 = vadd.f32 %v3261_v62, %v1573_v26 }
 0x186   : > { %v3263_v10 = vpop.f32.mrf.mxu1  ;;  %v4625_v25 = vpop.f32.mrf.mxu0 }
 0x187   : > { %v3264_v23 = vadd.f32 %v3263_v10, %v3262_v27  ;;  %v4628_v11 = vadd.f32 %v1574_v32, %v4499_v39 }
 0x188   : > { %v3265_v2 = vpop.f32.mrf.mxu1  ;;  %v4630_v45 = vpop.f32.mrf.mxu0 }
 0x189   : > { %4923 = vst [vmem:[#allocation3_spill] sm:$0xff] %v4628_v11  ;;  %v1579_v17 = vadd.f32 %v4575_v58, %v3264_v23 }
 0x18a   : > { %v3266_v41 = vpop.f32.mrf.mxu1  ;;  %v4633_v22 = vpop.f32.mrf.mxu0 }
 0x18b   : > { %v3267_v6 = vadd.f32 %v3266_v41, %v3265_v2  ;;  %v4636_v9 = vadd.f32 %v1579_v17, %v4493_v30 }
 0x18c   : > { %v3268_v26 = vpop.f32.mrf.mxu1  ;;  %v3356_v56 = vpop.f32.mrf.mxu0 }
 0x18d   : > { %v1582_v1 = vadd.f32 %v4580_v38, %v3267_v6 }
 0x18e   : > { %v3269_v62 = vpop.f32.mrf.mxu1  ;;  %v3357_v27 = vpop.f32.mrf.mxu0 }
 0x18f   : > { %v3270_v39 = vadd.f32 %v3269_v62, %v3268_v26  ;;  %v4639_v32 = vadd.f32 %v3357_v27, %v3356_v56  ;;  %v4642_v10 = vadd.f32 %v1582_v1, %v4502_v0 }
 0x190   : > { %v3271_v58 = vpop.f32.mrf.mxu1  ;;  %v4644_v23 = vpop.f32.mrf.mxu0 }
 0x191   : > { %v1587_v11 = vadd.f32 %v3270_v39, %v1586_v40 }
 0x192   : > { %v3272_v2 = vpop.f32.mrf.mxu1  ;;  %v4646_v41 = vpop.f32.mrf.mxu0 }
 0x193   : > { %v3273_v30 = vadd.f32 %v3272_v2, %v3271_v58  ;;  %v4649_v17 = vadd.f32 %v1587_v11, %v4506_v20 }
 0x194   : > { %v3274_v38 = vpop.f32.mrf.mxu1  ;;  %v4651_v6 = vpop.f32.mrf.mxu0 }
 0x195   : > { %v1590_v26 = vadd.f32 %v3273_v30, %v1589_v43 }
 0x196   : > { %v3275_v56 = vpop.f32.mrf.mxu1  ;;  %v4653_v62 = vpop.f32.mrf.mxu0 }
 0x197   : > { %v3276_v0 = vadd.f32 %v3275_v56, %v3274_v38  ;;  %v4656_v1 = vadd.f32 %v1590_v26, %v4512_v50 }
 0x198   : > { %v3277_v27 = vpop.f32.mrf.mxu1  ;;  %v4658_v40 = vpop.f32.mrf.mxu0 }
 0x199   : > { %4924 = vst [vmem:[#allocation4_spill] sm:$0xff] %v4656_v1  ;;  %v1595_v39 = vadd.f32 %v4585_v60, %v3276_v0 }
 0x19a   : > { %v3278_v58 = vpop.f32.mrf.mxu1  ;;  %v4661_v2 = vpop.f32.mrf.mxu0 }
 0x19b   : > { %v3279_v20 = vadd.f32 %v3278_v58, %v3277_v27  ;;  %v4664_v11 = vadd.f32 %v1595_v39, %v4516_v36 }
 0x19c   : > { %v3280_v43 = vpop.f32.mrf.mxu1  ;;  %v4666_v30 = vpop.f32.mrf.mxu0 }
 0x19d   : > { %4925 = vst [vmem:[#allocation5_spill] sm:$0xff] %v4664_v11  ;;  %v1598_v38 = vadd.f32 %v4590_v15, %v3279_v20 }
 0x19e   : > { %v3281_v56 = vpop.f32.mrf.mxu1  ;;  %v4669_v50 = vpop.f32.mrf.mxu0 }
 0x19f   : > { %v3282_v26 = vadd.f32 %v3281_v56, %v3280_v43  ;;  %v4672_v1 = vadd.f32 %v1598_v38, %v4522_v63 }
 0x1a0   : > { %v3283_v60 = vpop.f32.mrf.mxu1  ;;  %v4674_v0 = vpop.f32.mrf.mxu0 }
 0x1a1   : > { %4926 = vst [vmem:[#allocation6_spill] sm:$0xff] %v4672_v1  ;;  %v1603_v27 = vadd.f32 %v3282_v26, %v4597_v31 }
 0x1a2   : > { %v3284_v58 = vpop.f32.mrf.mxu1  ;;  %v4677_v36 = vpop.f32.mrf.mxu0 }
 0x1a3   : > { %v3285_v39 = vadd.f32 %v3284_v58, %v3283_v60  ;;  %v4680_v11 = vadd.f32 %v1603_v27, %v4532_v13 }
 0x1a4   : > { %v3286_v15 = vpop.f32.mrf.mxu1  ;;  %v4682_v20 = vpop.f32.mrf.mxu0 }
 0x1a5   : > { %4927 = vst [vmem:[#allocation7_spill] sm:$0xff] %v4680_v11  ;;  %v1606_v43 = vadd.f32 %v3285_v39, %v4604_v46 }
 0x1a6   : > { %v3287_v56 = vpop.f32.mrf.mxu1  ;;  %v4685_v63 = vpop.f32.mrf.mxu0 }
 0x1a7   : > { %v3288_v38 = vadd.f32 %v3287_v56, %v3286_v15  ;;  %v4688_v1 = vadd.f32 %v1606_v43, %v4542_v14 }
 0x1a8   : > { %v3289_v31 = vpop.f32.mrf.mxu1  ;;  %v4690_v26 = vpop.f32.mrf.mxu0 }
 0x1a9   : > { %4928 = vst [vmem:[#allocation8_spill] sm:$0xff] %v4688_v1  ;;  %v1611_v60 = vadd.f32 %v4595_v24, %v3288_v38 }
 0x1aa   : > { %v3290_v58 = vpop.f32.mrf.mxu1  ;;  %v4693_v13 = vpop.f32.mrf.mxu0 }
 0x1ab   : > { %v3291_v27 = vadd.f32 %v3290_v58, %v3289_v31  ;;  %v4696_v11 = vadd.f32 %v1611_v60, %v4550_v54 }
 0x1ac   : > { %v3292_v46 = vpop.f32.mrf.mxu1  ;;  %v4698_v39 = vpop.f32.mrf.mxu0 }
 0x1ad   : > { %4929 = vst [vmem:[#allocation9_spill] sm:$0xff] %v4696_v11  ;;  %v1614_v15 = vadd.f32 %v4602_v16, %v3291_v27 }
 0x1ae   : > { %v3293_v56 = vpop.f32.mrf.mxu1  ;;  %v4701_v14 = vpop.f32.mrf.mxu0 }
 0x1af   : > { %v3294_v43 = vadd.f32 %v3293_v56, %v3292_v46  ;;  %v4704_v1 = vadd.f32 %v1614_v15, %v4558_v28 }
 0x1b0   : > { %v3295_v24 = vpop.f32.mrf.mxu1  ;;  %v4706_v38 = vpop.f32.mrf.mxu0 }
 0x1b1   : > { %4930 = vst [vmem:[#allocation10_spill] sm:$0xff] %v4704_v1  ;;  %v1619_v31 = vadd.f32 %v3294_v43, %v4611_v57 }
 0x1b2   : > { %v3296_v58 = vpop.f32.mrf.mxu1  ;;  %v4709_v54 = vpop.f32.mrf.mxu0 }
 0x1b3   : > { %v3297_v60 = vadd.f32 %v3296_v58, %v3295_v24  ;;  %v4712_v11 = vadd.f32 %v1619_v31, %v4530_v42 }
 0x1b4   : > { %v3298_v16 = vpop.f32.mrf.mxu1  ;;  %v4714_v27 = vpop.f32.mrf.mxu0 }
 0x1b5   : > { %4931 = vst [vmem:[#allocation11_spill] sm:$0xff] %v4712_v11  ;;  %v1622_v46 = vadd.f32 %v3297_v60, %v4618_v53 }
 0x1b6   : > { %v3299_v56 = vpop.f32.mrf.mxu1  ;;  %v4717_v28 = vpop.f32.mrf.mxu0 }
 0x1b7   : > { %v3300_v15 = vadd.f32 %v3299_v56, %v3298_v16  ;;  %v4720_v1 = vadd.f32 %v1622_v46, %v4540_v37 }
 0x1b8   : > { %v3301_v57 = vpop.f32.mrf.mxu1  ;;  %v4722_v43 = vpop.f32.mrf.mxu0 }
 0x1b9   : > { %4932 = vst [vmem:[#allocation12_spill] sm:$0xff] %v4720_v1  ;;  %v1627_v24 = vadd.f32 %v4609_v8, %v3300_v15 }
 0x1ba   : > { %v3302_v58 = vpop.f32.mrf.mxu1  ;;  %v4725_v42 = vpop.f32.mrf.mxu0 }
 0x1bb   : > { %v3303_v31 = vadd.f32 %v3302_v58, %v3301_v57  ;;  %v4728_v11 = vadd.f32 %v1627_v24, %v4525_v3 }
 0x1bc   : > { %v3304_v53 = vpop.f32.mrf.mxu1  ;;  %v4730_v60 = vpop.f32.mrf.mxu0 }
 0x1bd   : > { %4933 = vst [vmem:[#allocation13_spill] sm:$0xff] %v4728_v11  ;;  %v1630_v16 = vadd.f32 %v4616_v59, %v3303_v31 }
 0x1be   : > { %v3305_v56 = vpop.f32.mrf.mxu1  ;;  %v4733_v37 = vpop.f32.mrf.mxu0 }
 0x1bf   : > { %v3306_v46 = vadd.f32 %v3305_v56, %v3304_v53  ;;  %v4736_v1 = vadd.f32 %v1630_v16, %v4535_v48 }
 0x1c0   : > { %v3307_v8 = vpop.f32.mrf.mxu1  ;;  %v4738_v15 = vpop.f32.mrf.mxu0 }
 0x1c1   : > { %4934 = vst [vmem:[#allocation14_spill] sm:$0xff] %v4736_v1  ;;  %v1635_v57 = vadd.f32 %v3306_v46, %v4625_v25 }
 0x1c2   : > { %v3308_v3 = vpop.f32.mrf.mxu1  ;;  %v4741_v24 = vpop.f32.mrf.mxu0 }
 0x1c3   : > { %v3309_v58 = vadd.f32 %v3308_v3, %v3307_v8  ;;  %v4744_v11 = vadd.f32 %v1635_v57, %v4548_v47 }
 0x1c4   : > { %v3310_v59 = vpop.f32.mrf.mxu1  ;;  %v4746_v31 = vpop.f32.mrf.mxu0 }
 0x1c5   : > { %4935 = vst [vmem:[#allocation15_spill] sm:$0xff] %v4744_v11  ;;  %v1638_v53 = vadd.f32 %v3309_v58, %v4633_v22 }
 0x1c6   : > { %v3311_v56 = vpop.f32.mrf.mxu1  ;;  %v4749_v48 = vpop.f32.mrf.mxu0 }
 0x1c7   : > { %v3312_v16 = vadd.f32 %v3311_v56, %v3310_v59  ;;  %v4753_v1 = vadd.f32 %v1638_v53, %v4556_v7  ;;  %v3364_v7 = vadd.f32 %v4653_v62, %v4651_v6  ;;  %v3367_v56 = vadd.f32 %v4661_v2, %v4658_v40 }
 0x1c8   : > { %v3313_v25 = vpop.f32.mrf.mxu1  ;;  %v4755_v46 = vpop.f32.mrf.mxu0  ;;  %v3361_v6 = vadd.f32 %v4646_v41, %v4644_v23 }
 0x1c9   : > { %v1643_v8 = vadd.f32 %v4623_v44, %v3312_v16 }
 0x1ca   : > { %v3314_v47 = vpop.f32.mrf.mxu1  ;;  %v4758_v57 = vpop.f32.mrf.mxu0 }
 0x1cb   : > { %v4761_v3 = vadd.f32 %v1643_v8, %v4545_v55  ;;  %v3315_v22 = vadd.f32 %v3314_v47, %v3313_v25 }
 0x1cc   : > { %v4763_v58 = vpop.f32.mrf.mxu0  ;;  %v3590_v11 = vpop.f32.mrf.mxu1 }
 0x1cd   : > { %4936 = vst [vmem:[#allocation16_spill] sm:$0xff] %v4761_v3  ;;  %v1646_v59 = vadd.f32 %v4630_v45, %v3315_v22  ;;  %v2142_v55 = vadd.f32 %v3590_v11, %v3364_v7 }
 0x1ce   : > { %v4768_v53 = vpop.f32.mrf.mxu0  ;;  %v2133_v44 = vpop.f32.mrf.mxu1 }
 0x1cf   : > { %v4773_v16 = vadd.f32 %v1646_v59, %v4553_v49  ;;  %v2134_v25 = vadd.f32 %v4639_v32, %v2133_v44  ;;  %v2262_v40 = vadd.f32 %v2142_v55, %v4567_v5  ;;  %v3370_v5 = vadd.f32 %v4669_v50, %v4666_v30 }
 0x1d0   : > { %v4776_v8 = vpop.f32.mrf.mxu0  ;;  %v3591_v47 = vpop.f32.mrf.mxu1 }
 0x1d1   : > { %v2260_v45 = vadd.f32 %v2134_v25, %v4561_v18  ;;  %v2145_v62 = vadd.f32 %v3591_v47, %v3367_v56  ;;  %v3376_v18 = vadd.f32 %v4685_v63, %v4682_v20 }
 0x1d2   : > { %v4781_v22 = vpop.f32.mrf.mxu0  ;;  %v2136_v3 = vpop.f32.mrf.mxu1 }
 0x1d3   : > { %v2263_v49 = vadd.f32 %v2145_v62, %v4570_v19  ;;  %v2137_v2 = vadd.f32 %v3361_v6, %v2136_v3  ;;  %v3379_v19 = vadd.f32 %v4693_v13, %v4690_v26  ;;  %v2554_v3 = vmul.f32 %v2260_v45, %v2260_v45 }
 0x1d4   : > { %v4790_v32 = vpop.f32.mrf.mxu0  ;;  %v3594_v23 = vpop.f32.mrf.mxu1  ;;  %v3373_v26 = vadd.f32 %v4677_v36, %v4674_v0 }
 0x1d5   : > { %v2981_v41 = vpack.c.bf16 %v2263_v49, %v2262_v40  ;;  %v2261_v11 = vadd.f32 %v2137_v2, %v4564_v33  ;;  %v2158_v25 = vadd.f32 %v3594_v23, %v3376_v18  ;;  %v2556_v33 = vmul.f32 %v2262_v40, %v2262_v40 }
 0x1d6   : > { %v4799_v7 = vpop.f32.mrf.mxu0  ;;  %v2149_v59 = vpop.f32.mrf.mxu1  ;;  %v2557_v13 = vmul.f32 %v2263_v49, %v2263_v49 }
 0x1d7   : > { %3053 = vst [vmem:[%s4788_s26 + $0x8] sm:$0xff] %v2981_v41   ;;  %v2976_v44 = vpack.c.bf16 %v2261_v11, %v2260_v45  ;;  %v2516_v56 = vadd.f32 %v2261_v11, %v2260_v45  ;;  %v2555_v55 = vmul.f32 %v2261_v11, %v2261_v11  ;;  %v2150_v20 = vadd.f32 %v3370_v5, %v2149_v59 }
 0x1d8   : > { %v4802_v63 = vpop.f32.mrf.mxu0  ;;  %v3595_v47 = vpop.f32.mrf.mxu1  ;;  %v2266_v23 = vadd.f32 %v2158_v25, %v4583_v52  ;;  %v3388_v5 = vadd.f32 %v4717_v28, %v4714_v27 }
 0x1d9   : > { %2977 = vst [vmem:[%s4788_s26] sm:$0xff] %v2976_v44   ;;  %v2517_v6 = vadd.f32 %v2516_v56, %v2262_v40  ;;  %v2586_v30 = vadd.f32 %v2555_v55, %v2554_v3  ;;  %v2161_v50 = vadd.f32 %v3595_v47, %v3379_v19  ;;  %v2264_v62 = vadd.f32 %v2150_v20, %v4573_v51 }
 0x1da   : > { %v4808_v2 = vpop.f32.mrf.mxu0  ;;  %v2152_v45 = vpop.f32.mrf.mxu1  ;;  %v3382_v40 = vadd.f32 %v4701_v14, %v4698_v39  ;;  %v3391_v39 = vadd.f32 %v4725_v42, %v4722_v43 }
 0x1db   : > { %v2587_v41 = vadd.f32 %v2586_v30, %v2556_v33  ;;  %v2518_v18 = vadd.f32 %v2517_v6, %v2263_v49  ;;  %v2267_v11 = vadd.f32 %v2161_v50, %v4588_v35  ;;  %v2153_v0 = vadd.f32 %v3373_v26, %v2152_v45 }
 0x1dc   : > { %v4816_v36 = vpop.f32.mrf.mxu0  ;;  %v3598_v51 = vpop.f32.mrf.mxu1  ;;  %v2558_v3 = vmul.f32 %v2264_v62, %v2264_v62  ;;  %v2560_v6 = vmul.f32 %v2266_v23, %v2266_v23 }
 0x1dd   : > { %v2519_v19 = vadd.f32 %v2518_v18, %v2264_v62  ;;  %v2588_v59 = vadd.f32 %v2587_v41, %v2557_v13  ;;  %v2991_v44 = vpack.c.bf16 %v2267_v11, %v2266_v23  ;;  %v2265_v52 = vadd.f32 %v2153_v0, %v4578_v12 }
 0x1de   : > { %v4819_v49 = vpop.f32.mrf.mxu0  ;;  %v2165_v35 = vpop.f32.mrf.mxu1  ;;  %v2174_v27 = vadd.f32 %v3598_v51, %v3388_v5  ;;  %v3385_v12 = vadd.f32 %v4709_v54, %v4706_v38  ;;  %v2561_v41 = vmul.f32 %v2267_v11, %v2267_v11  ;;  %v3394_v0 = vadd.f32 %v4733_v37, %v4730_v60 }
 0x1df   : > { %v2589_v14 = vadd.f32 %v2588_v59, %v2558_v3  ;;  %3055 = vst [vmem:[%s4788_s26 + $0x18] sm:$0xff] %v2991_v44   ;;  %v2166_v28 = vadd.f32 %v3382_v40, %v2165_v35  ;;  %v2986_v56 = vpack.c.bf16 %v2265_v52, %v2264_v62  ;;  %v2520_v55 = vadd.f32 %v2519_v19, %v2265_v52 }
 0x1e0   : > { %v2559_v25 = vmul.f32 %v2265_v52, %v2265_v52  ;;  %v4824_v20 = vpop.f32.mrf.mxu0  ;;  %v3599_v47 = vpop.f32.mrf.mxu1  ;;  %v2270_v13 = vadd.f32 %v2174_v27, %v4607_v29  ;;  %v3397_v37 = vadd.f32 %v4741_v24, %v4738_v15  ;;  %v3412_v24 = vadd.f32 %v4799_v7, %v4790_v32 }
 0x1e1   : > { %v2177_v33 = vadd.f32 %v3599_v47, %v3391_v39  ;;  %3054 = vst [vmem:[%s4788_s26 + $0x10] sm:$0xff] %v2986_v56   ;;  %v2521_v30 = vadd.f32 %v2520_v55, %v2266_v23  ;;  %v2268_v43 = vadd.f32 %v2166_v28, %v4593_v61  ;;  %v3400_v23 = vadd.f32 %v4749_v48, %v4746_v31 }
 0x1e2   : > { %v2590_v50 = vadd.f32 %v2589_v14, %v2559_v25  ;;  %v4830_v42 = vpop.f32.mrf.mxu0  ;;  %v2168_v26 = vpop.f32.mrf.mxu1  ;;  %v2564_v14 = vmul.f32 %v2270_v13, %v2270_v13 }
 0x1e3   : > { %v2271_v62 = vadd.f32 %v2177_v33, %v4614_v34  ;;  %v2169_v45 = vadd.f32 %v3385_v12, %v2168_v26  ;;  %v2522_v40 = vadd.f32 %v2521_v30, %v2267_v11  ;;  %v2562_v34 = vmul.f32 %v2268_v43, %v2268_v43 }
 0x1e4   : > { %v2591_v18 = vadd.f32 %v2590_v50, %v2560_v6  ;;  %v4834_v38 = vpop.f32.mrf.mxu0  ;;  %v3602_v54 = vpop.f32.mrf.mxu1  ;;  %v3403_v11 = vadd.f32 %v4758_v57, %v4755_v46  ;;  %v3406_v26 = vadd.f32 %v4768_v53, %v4763_v58  ;;  %v3409_v53 = vadd.f32 %v4781_v22, %v4776_v8 }
 0x1e5   : > { %v3001_v5 = vpack.c.bf16 %v2271_v62, %v2270_v13  ;;  %v2269_v61 = vadd.f32 %v2169_v45, %v4600_v21  ;;  %v2523_v29 = vadd.f32 %v2522_v40, %v2268_v43  ;;  %v2190_v31 = vadd.f32 %v3602_v54, %v3400_v23 }
 0x1e6   : > { %v2592_v51 = vadd.f32 %v2591_v18, %v2561_v41  ;;  %v4841_v19 = vpop.f32.mrf.mxu0  ;;  %v2181_v3 = vpop.f32.mrf.mxu1  ;;  %v2565_v12 = vmul.f32 %v2271_v62, %v2271_v62 }
 0x1e7   : > { %3057 = vst [vmem:[%s4788_s26 + $0x28] sm:$0xff] %v3001_v5   ;;  %v2996_v59 = vpack.c.bf16 %v2269_v61, %v2268_v43  ;;  %v2563_v44 = vmul.f32 %v2269_v61, %v2269_v61  ;;  %v2524_v52 = vadd.f32 %v2523_v29, %v2269_v61  ;;  %v2182_v21 = vadd.f32 %v3394_v0, %v2181_v3  ;;  %v4937_v43 = vld [vmem:[#allocation3_spill] sm:$0xff]  ;;  %v4938_v3 = vld [vmem:[#allocation5_spill] sm:$0xff] }
 0x1e8   : > { %v2593_v48 = vadd.f32 %v2592_v51, %v2562_v34  ;;  %v4846_v35 = vpop.f32.mrf.mxu0  ;;  %v3603_v60 = vpop.f32.mrf.mxu1  ;;  %v2274_v55 = vadd.f32 %v2190_v31, %v4636_v9 }
 0x1e9   : > { %3056 = vst [vmem:[%s4788_s26 + $0x20] sm:$0xff] %v2996_v59   ;;  %v2193_v39 = vadd.f32 %v3603_v60, %v3403_v11  ;;  %v2525_v27 = vadd.f32 %v2524_v52, %v2270_v13  ;;  %v2272_v46 = vadd.f32 %v2182_v21, %v4621_v4  ;;  %v4939_v59 = vld [vmem:[#allocation6_spill] sm:$0xff]  ;;  %v3424_v60 = vadd.f32 %v4841_v19, %v4834_v38 }
 0x1ea   : > { %v2594_v28 = vadd.f32 %v2593_v48, %v2563_v44  ;;  %v3426_v57 = vpop.f32.mrf.mxu0  ;;  %v2184_v56 = vpop.f32.mrf.mxu1  ;;  %v2568_v0 = vmul.f32 %v2274_v55, %v2274_v55 }
 0x1eb   : > { %v2275_v25 = vadd.f32 %v2193_v39, %v4642_v10  ;;  %v2185_v47 = vadd.f32 %v3397_v37, %v2184_v56  ;;  %v2526_v6 = vadd.f32 %v2525_v27, %v2271_v62  ;;  %v2566_v10 = vmul.f32 %v2272_v46, %v2272_v46  ;;  %v4940_v39 = vld [vmem:[#allocation4_spill] sm:$0xff] }
 0x1ec   : > { %v2595_v33 = vadd.f32 %v2594_v28, %v2564_v14  ;;  %v4854_v30 = vpop.f32.mrf.mxu0  ;;  %v3606_v15 = vpop.f32.mrf.mxu1  ;;  %v3415_v62 = vadd.f32 %v4808_v2, %v4802_v63  ;;  %v3418_v14 = vadd.f32 %v4819_v49, %v4816_v36  ;;  %v3421_v36 = vadd.f32 %v4830_v42, %v4824_v20 }
 0x1ed   : > { %v3011_v50 = vpack.c.bf16 %v2275_v25, %v2274_v55  ;;  %v2273_v4 = vadd.f32 %v2185_v47, %v4937_v43  ;;  %v2527_v9 = vadd.f32 %v2526_v6, %v2272_v46  ;;  %v2206_v32 = vadd.f32 %v3606_v15, %v3412_v24 }
 0x1ee   : > { %v2596_v13 = vadd.f32 %v2595_v33, %v2565_v12  ;;  %v4861_v45 = vpop.f32.mrf.mxu0  ;;  %v2197_v41 = vpop.f32.mrf.mxu1  ;;  %v2569_v48 = vmul.f32 %v2275_v25, %v2275_v25  ;;  %v3427_v47 = vadd.f32 %v3426_v57, %v4846_v35 }
 0x1ef   : > { %3059 = vst [vmem:[%s4788_s26 + $0x38] sm:$0xff] %v3011_v50   ;;  %v3006_v18 = vpack.c.bf16 %v2273_v4, %v2272_v46  ;;  %v2567_v40 = vmul.f32 %v2273_v4, %v2273_v4  ;;  %v2528_v54 = vadd.f32 %v2527_v9, %v2273_v4  ;;  %v2198_v23 = vadd.f32 %v3406_v26, %v2197_v41  ;;  %v4941_v26 = vld [vmem:[#allocation7_spill] sm:$0xff]  ;;  %v4943_v41 = vld [vmem:[#allocation10_spill] sm:$0xff] }
 0x1f0   : > { %v2597_v7 = vadd.f32 %v2596_v13, %v2566_v10  ;;  %v4866_v5 = vpop.f32.mrf.mxu0  ;;  %v3607_v58 = vpop.f32.mrf.mxu1  ;;  %v2278_v11 = vadd.f32 %v2206_v32, %v4938_v3  ;;  %v4942_v10 = vld [vmem:[#allocation9_spill] sm:$0xff] }
 0x1f1   : > { %3058 = vst [vmem:[%s4788_s26 + $0x30] sm:$0xff] %v3006_v18   ;;  %v2209_v61 = vadd.f32 %v3607_v58, %v3415_v62  ;;  %v2529_v29 = vadd.f32 %v2528_v54, %v2274_v55  ;;  %v2276_v63 = vadd.f32 %v2198_v23, %v4649_v17  ;;  %v4944_v58 = vld [vmem:[#allocation8_spill] sm:$0xff] }
 0x1f2   : > { %v2598_v34 = vadd.f32 %v2597_v7, %v2567_v40  ;;  %v4872_v2 = vpop.f32.mrf.mxu0  ;;  %v2200_v51 = vpop.f32.mrf.mxu1  ;;  %v2572_v50 = vmul.f32 %v2278_v11, %v2278_v11 }
 0x1f3   : > { %v2279_v44 = vadd.f32 %v2209_v61, %v4939_v59  ;;  %v2201_v31 = vadd.f32 %v3409_v53, %v2200_v51  ;;  %v2530_v21 = vadd.f32 %v2529_v29, %v2275_v25  ;;  %v2570_v28 = vmul.f32 %v2276_v63, %v2276_v63 }
 0x1f4   : > { %v2599_v52 = vadd.f32 %v2598_v34, %v2568_v0  ;;  %v3434_v8 = vpop.f32.mrf.mxu0  ;;  %v3610_v22 = vpop.f32.mrf.mxu1  ;;  %v3430_v61 = vadd.f32 %v4861_v45, %v4854_v30 }
 0x1f5   : > { %v3021_v37 = vpack.c.bf16 %v2279_v44, %v2278_v11  ;;  %v2277_v17 = vadd.f32 %v2201_v31, %v4940_v39  ;;  %v2531_v27 = vadd.f32 %v2530_v21, %v2276_v63  ;;  %v2222_v33 = vadd.f32 %v3610_v22, %v3424_v60  ;;  %v4945_v39 = vld [vmem:[#allocation11_spill] sm:$0xff] }
 0x1f6   : > { %v2600_v46 = vadd.f32 %v2599_v52, %v2569_v48  ;;  %v3435_v56 = vpop.f32.mrf.mxu0  ;;  %v2213_v55 = vpop.f32.mrf.mxu1  ;;  %v2573_v40 = vmul.f32 %v2279_v44, %v2279_v44  ;;  %v3433_v22 = vadd.f32 %v4872_v2, %v4866_v5 }
 0x1f7   : > { %3061 = vst [vmem:[%s4788_s26 + $0x48] sm:$0xff] %v3021_v37   ;;  %v3016_v25 = vpack.c.bf16 %v2277_v17, %v2276_v63  ;;  %v2571_v12 = vmul.f32 %v2277_v17, %v2277_v17  ;;  %v2532_v38 = vadd.f32 %v2531_v27, %v2277_v17  ;;  %v2214_v19 = vadd.f32 %v3418_v14, %v2213_v55 }
 0x1f8   : > { %v2601_v6 = vadd.f32 %v2600_v46, %v2570_v28  ;;  %v3437_v15 = vpop.f32.mrf.mxu0  ;;  %v3611_v24 = vpop.f32.mrf.mxu1  ;;  %v2282_v13 = vadd.f32 %v2222_v33, %v4942_v10  ;;  %v3436_v42 = vadd.f32 %v3435_v56, %v3434_v8  ;;  %v4946_v28 = vld [vmem:[#allocation13_spill] sm:$0xff]  ;;  %v4947_v56 = vld [vmem:[#allocation14_spill] sm:$0xff] }
 0x1f9   : > { %3060 = vst [vmem:[%s4788_s26 + $0x40] sm:$0xff] %v3016_v25   ;;  %v2225_v49 = vadd.f32 %v3611_v24, %v3427_v47  ;;  %v2533_v43 = vadd.f32 %v2532_v38, %v2278_v11  ;;  %v2280_v9 = vadd.f32 %v2214_v19, %v4941_v26  ;;  %v4948_v19 = vld [vmem:[#allocation12_spill] sm:$0xff] }
 0x1fa   : > { %v2602_v4 = vadd.f32 %v2601_v6, %v2571_v12  ;;  %v3438_v35 = vpop.f32.mrf.mxu0  ;;  %v2216_v57 = vpop.f32.mrf.mxu1  ;;  %v2576_v45 = vmul.f32 %v2282_v13, %v2282_v13 }
 0x1fb   : > { %v2283_v62 = vadd.f32 %v2225_v49, %v4943_v41  ;;  %v2217_v18 = vadd.f32 %v3421_v36, %v2216_v57  ;;  %v2534_v7 = vadd.f32 %v2533_v43, %v2279_v44  ;;  %v2574_v29 = vmul.f32 %v2280_v9, %v2280_v9 }
 0x1fc   : > { %v2603_v32 = vadd.f32 %v2602_v4, %v2572_v50  ;;  %v3440_v54 = vpop.f32.mrf.mxu0  ;;  %v3614_v20 = vpop.f32.mrf.mxu1  ;;  %v3439_v3 = vadd.f32 %v3438_v35, %v3437_v15 }
 0x1fd   : > { %v3031_v23 = vpack.c.bf16 %v2283_v62, %v2282_v13  ;;  %v2281_v53 = vadd.f32 %v2217_v18, %v4944_v58  ;;  %v2535_v0 = vadd.f32 %v2534_v7, %v2280_v9  ;;  %v2238_v44 = vadd.f32 %v3614_v20, %v3436_v42 }
 0x1fe   : > { %v2604_v34 = vadd.f32 %v2603_v32, %v2573_v40  ;;  %v3441_v63 = vpop.f32.mrf.mxu0  ;;  %v2229_v51 = vpop.f32.mrf.mxu1  ;;  %v2577_v25 = vmul.f32 %v2283_v62, %v2283_v62 }
 0x1ff   : > { %3063 = vst [vmem:[%s4788_s26 + $0x58] sm:$0xff] %v3031_v23   ;;  %v3026_v11 = vpack.c.bf16 %v2281_v53, %v2280_v9  ;;  %v2575_v59 = vmul.f32 %v2281_v53, %v2281_v53  ;;  %v2536_v48 = vadd.f32 %v2535_v0, %v2281_v53  ;;  %v2230_v52 = vadd.f32 %v3430_v61, %v2229_v51  ;;  %v4950_v51 = vld [vmem:[#allocation16_spill] sm:$0xff] }
 0x200   : > { %v2605_v31 = vadd.f32 %v2604_v34, %v2574_v29  ;;  %v3443_v21 = vpop.f32.mrf.mxu0  ;;  %v3615_v8 = vpop.f32.mrf.mxu1  ;;  %v2286_v46 = vadd.f32 %v2238_v44, %v4946_v28  ;;  %v3442_v2 = vadd.f32 %v3441_v63, %v3440_v54  ;;  %v4949_v54 = vld [vmem:[#allocation15_spill] sm:$0xff] }
 0x201   : > { %3062 = vst [vmem:[%s4788_s26 + $0x50] sm:$0xff] %v3026_v11   ;;  %v2241_v30 = vadd.f32 %v3615_v8, %v3439_v3  ;;  %v2537_v60 = vadd.f32 %v2536_v48, %v2282_v13  ;;  %v2284_v17 = vadd.f32 %v2230_v52, %v4945_v39 }
 0x202   : > { %v2606_v37 = vadd.f32 %v2605_v31, %v2575_v59  ;;  %v3444_v14 = vpop.f32.mrf.mxu0  ;;  %v2232_v27 = vpop.f32.mrf.mxu1 }
 0x203   : > { %v2287_v55 = vadd.f32 %v2241_v30, %v4947_v56  ;;  %v2233_v47 = vadd.f32 %v3433_v22, %v2232_v27  ;;  %v2538_v33 = vadd.f32 %v2537_v60, %v2283_v62  ;;  %v2578_v36 = vmul.f32 %v2284_v17, %v2284_v17 }
 0x204   : > { %v2607_v12 = vadd.f32 %v2606_v37, %v2576_v45  ;;  %v3446_v6 = vpop.f32.mrf.mxu0  ;;  %v3618_v5 = vpop.f32.mrf.mxu1  ;;  %v2580_v62 = vmul.f32 %v2286_v46, %v2286_v46  ;;  %v3445_v18 = vadd.f32 %v3444_v14, %v3443_v21 }
 0x205   : > { %v3041_v38 = vpack.c.bf16 %v2287_v55, %v2286_v46  ;;  %v2285_v15 = vadd.f32 %v2233_v47, %v4948_v19  ;;  %v2539_v24 = vadd.f32 %v2538_v33, %v2284_v17  ;;  %v2581_v61 = vmul.f32 %v2287_v55, %v2287_v55 }
 0x206   : > { %v2608_v49 = vadd.f32 %v2607_v12, %v2577_v25  ;;  %v3447_v50 = vpop.f32.mrf.mxu0  ;;  %v2245_v43 = vpop.f32.mrf.mxu1 }
 0x207   : > { %3065 = vst [vmem:[%s4788_s26 + $0x68] sm:$0xff] %v3041_v38   ;;  %v3036_v4 = vpack.c.bf16 %v2285_v15, %v2284_v17  ;;  %v2579_v26 = vmul.f32 %v2285_v15, %v2285_v15  ;;  %v3448_v9 = vadd.f32 %v3447_v50, %v3446_v6  ;;  %v2246_v35 = vadd.f32 %v3442_v2, %v2245_v43 }
 0x208   : > { %v2609_v57 = vadd.f32 %v2608_v49, %v2578_v36  ;;  %v2540_v10 = vadd.f32 %v2539_v24, %v2285_v15  ;;  %v3449_v13 = vpop.f32.mrf.mxu0  ;;  %v3619_v41 = vpop.f32.mrf.mxu1 }
 0x209   : > { %3064 = vst [vmem:[%s4788_s26 + $0x60] sm:$0xff] %v3036_v4   ;;  %v2254_v7 = vadd.f32 %v3618_v5, %v3448_v9  ;;  %v2288_v20 = vadd.f32 %v2246_v35, %v4949_v54 }
 0x20a   : > { %v2541_v40 = vadd.f32 %v2540_v10, %v2286_v46  ;;  %v2610_v32 = vadd.f32 %v2609_v57, %v2579_v26  ;;  %v3450_v42 = vpop.f32.mrf.mxu0  ;;  %v2248_v23 = vpop.f32.mrf.mxu1 }
 0x20b   : > { %v3451_v58 = vadd.f32 %v3450_v42, %v3449_v13  ;;  %v2249_v53 = vadd.f32 %v3445_v18, %v2248_v23  ;;  %v2290_v3 = vadd.f32 %v2254_v7, %v4950_v51  ;;  %v2582_v59 = vmul.f32 %v2288_v20, %v2288_v20 }
 0x20c   : > { %v2611_v0 = vadd.f32 %v2610_v32, %v2580_v62  ;;  %v2542_v29 = vadd.f32 %v2541_v40, %v2287_v55 }
 0x20d   : > { %v2257_v34 = vadd.f32 %v3619_v41, %v3451_v58  ;;  %v2289_v63 = vadd.f32 %v2249_v53, %v4753_v1  ;;  %v2584_v30 = vmul.f32 %v2290_v3, %v2290_v3 }
 0x20e   : > { %v2543_v11 = vadd.f32 %v2542_v29, %v2288_v20  ;;  %v2612_v44 = vadd.f32 %v2611_v0, %v2581_v61 }
 0x20f   : > { %v2291_v31 = vadd.f32 %v2257_v34, %v4773_v16  ;;  %v3046_v48 = vpack.c.bf16 %v2289_v63, %v2288_v20  ;;  %v2583_v52 = vmul.f32 %v2289_v63, %v2289_v63 }
 0x210   : > { %v2613_v21 = vadd.f32 %v2612_v44, %v2582_v59  ;;  %v2544_v8 = vadd.f32 %v2543_v11, %v2289_v63 }
 0x211   : > { %v3051_v22 = vpack.c.bf16 %v2291_v31, %v2290_v3  ;;  %3066 = vst [vmem:[%s4788_s26 + $0x70] sm:$0xff] %v3046_v48   ;;  %v2585_v37 = vmul.f32 %v2291_v31, %v2291_v31 }
 0x212   : > { %v2545_v45 = vadd.f32 %v2544_v8, %v2290_v3  ;;  %v2614_v60 = vadd.f32 %v2613_v21, %v2583_v52 }
 0x213   : > { %3067 = vst [vmem:[%s4788_s26 + $0x78] sm:$0xff] %v3051_v22  }
 0x214   : > { %v2546_v1 = vadd.f32 %v2545_v45, %v2291_v31  ;;  %v2615_v39 = vadd.f32 %v2614_v60, %v2584_v30 }
 0x216   : > { %v2547_v17 = vrot.slane %v2546_v1, 4  ;;  %v2616_v14 = vadd.f32 %v2615_v39, %v2585_v37 }
 0x218   : > { %v2548_v27 = vadd.f32 %v2547_v17, %v2546_v1  ;;  %v2617_v28 = vrot.slane %v2616_v14, 4 }
 0x21a   : > { %v2549_v46 = vrot.slane %v2548_v27, 2  ;;  %v2618_v16 = vadd.f32 %v2617_v28, %v2616_v14 }
 0x21c   : > { %v2550_v56 = vadd.f32 %v2549_v46, %v2548_v27  ;;  %v2619_v55 = vrot.slane %v2618_v16, 2 }
 0x21e   : > { %v2551_v47 = vrot.slane %v2550_v56, 1  ;;  %v2620_v25 = vadd.f32 %v2619_v55, %v2618_v16 }
 0x220   : > { %v2552_v12 = vadd.f32 %v2551_v47, %v2550_v56  ;;  %v2621_v33 = vrot.slane %v2620_v25, 1 }
 0x222   : > { %2553 = vst [vmem:[%s182_s30] sm:$0x1] %v2552_v12  ;;  %v2622_v6 = vadd.f32 %v2621_v33, %v2620_v25 }
 0x224   : > { %2623 = vst [vmem:[%s182_s30 + $0x1] sm:$0x1] %v2622_v6 }
 0x225 PF: > { %s14_s12 = sadd.s32 1, %s3742_s12  }
 0x226   : > { %p11_p5 = scmp.ge.s32.totalorder %s14_s12, 4  }
 0x228   :  { %13 = sbr.rel (!%p11_p5) target bundleno = 1 (0x1), region = 72 }

</bundles_post_ra>
